<compile_context>
chip_gen: v6e
topology: v6e:2x2x1
jax: 0.10.0
libtpu: 0.0.40
codegen_flags: <defaults>
</compile_context>

<pallas_src>
import jax
import jax.numpy as jnp
from jax.experimental import pallas as pl
from jax.experimental.pallas import tpu as pltpu


def _round_up(x, m):
    return ((x + m - 1) // m) * m


def _gru_chunk_kernel(
    # inputs
    ug_ref,   # (TC, Bp, 3H+1) f32 : [u-projection + gate bias | tau]
    x0_ref,   # (Bp, S)  f32
    h0_ref,   # (Bp, H)  f32
    Wgx_ref,  # (S, 3H)  f32 (VPU path, S<=8) or bf16 (MXU path)
    Wgh_ref,  # (H, 3H)  bf16 fused [r | z | n] hidden weights
    Wax_ref,  # (H, 2S)  bf16 fused [alpha_gate | W__h_to_x]
    bax_ref,  # (1, 2S)  f32
    At_ref,   # (S, S)   f32  (A^T, pre-transposed in the wrapper)
    # output
    out_ref,  # (TC, Bp, P) f32 : [x_next | h_new | alpha | 0-pad], P % 128 == 0
    # scratch (persists across grid steps -> (x, h) carry)
    x_scr,    # (Bp, S) f32
    h_scr,    # (Bp, H) f32
):
    TC, Bp, _ = ug_ref.shape
    S = x0_ref.shape[1]
    H = h0_ref.shape[1]
    P = out_ref.shape[2]
    OUTW = 2 * S + H

    @pl.when(pl.program_id(0) == 0)
    def _():
        x_scr[...] = x0_ref[...]
        h_scr[...] = h0_ref[...]

    # Loop-invariant loads / broadcasts hoisted (broadcast_in_dim is not CSE'd).
    Wgx = Wgx_ref[...]
    Wgh = Wgh_ref[...]
    Wax = Wax_ref[...]
    At = At_ref[...]
    bax = jnp.broadcast_to(bax_ref[...], (Bp, 2 * S))
    lane_pad = jnp.zeros((Bp, P - OUTW), jnp.float32) if P > OUTW else None

    def step(tloc, carry):
        x, h = carry                               # (Bp,S) f32, (Bp,H) f32
        slab = ug_ref[tloc]                        # (Bp, 3H+1)
        gates_u = slab[:, : 3 * H]                 # u @ Wgu + bg (precomputed)
        tau_t = slab[:, 3 * H: 3 * H + 1]          # (Bp, 1)

        # x-term of the gates: S is tiny -> VPU broadcast-FMAs, no MXU push.
        if S <= 8:
            gates_x = x[:, 0:1] * Wgx[0:1, :]
            for j in range(1, S):
                gates_x = gates_x + x[:, j:j + 1] * Wgx[j:j + 1, :]
        else:
            gates_x = jnp.dot(x.astype(Wgx.dtype), Wgx,
                              preferred_element_type=jnp.float32)

        # h-term: one bf16 MXU dot, f32 accumulation.
        gates_h = jnp.dot(h.astype(Wgh.dtype), Wgh,
                          preferred_element_type=jnp.float32)

        gates = gates_u + gates_x + gates_h
        r = jax.nn.sigmoid(gates[:, :H])
        z = jax.nn.sigmoid(gates[:, H:2 * H])
        n = jnp.tanh(gates[:, 2 * H:3 * H] + r * h)
        h_new = (1.0 - z) * n + z * h

        # forward-Euler discretisation of the linear dynamics, on the VPU.
        if S <= 8:
            x_lin = x[:, 0:1] * At[0:1, :]
            for j in range(1, S):
                x_lin = x_lin + x[:, j:j + 1] * At[j:j + 1, :]
        else:
            x_lin = jnp.dot(x, At, preferred_element_type=jnp.float32)
        x_mid = x + tau_t * x_lin

        # fused alpha-gate / h->x projection; alpha-gated convex state update.
        ax = jnp.dot(h_new.astype(Wax.dtype), Wax,
                     preferred_element_type=jnp.float32) + bax
        alpha = jax.nn.sigmoid(ax[:, :S])
        x_hat = ax[:, S:]
        x_next = (1.0 - alpha) * x_mid + alpha * x_hat

        # lane-dense per-step output slab
        pieces = [x_next, h_new, alpha]
        if lane_pad is not None:
            pieces.append(lane_pad)
        out_ref[tloc] = jnp.concatenate(pieces, axis=-1)      # (Bp, P)
        return (x_next, h_new)

    x_fin, h_fin = jax.lax.fori_loop(
        0, TC, step, (x_scr[...], h_scr[...]),
        unroll=True if TC <= 8 else 4,   # partial unroll keeps LLO visibility
    )
    x_scr[...] = x_fin
    h_scr[...] = h_fin


def gru_forward(rnn_input, hidden_state, tau, params, *, state_dim, hidden_size,
                t_chunk=4):
    """rnn_input: (B, T, In)  hidden_state: (1, B, z_size)  tau: (B, T, 1)."""
    B, T, In = rnn_input.shape
    S, H = state_dim, hidden_size
    z_size = S + H
    assert hidden_state.shape == (1, B, z_size)
    f32, bf16 = jnp.float32, jnp.bfloat16
    p = params

    # ---- pack parameters once (outside the hot loop) -----------------------
    Wgx = jnp.concatenate([p["Wrx"], p["Wzx"], p["Wnx"]], axis=1).astype(f32)  # (S,3H)
    Wgu = jnp.concatenate([p["Wru"], p["Wzu"], p["Wnu"]], axis=1).astype(f32)  # (In,3H)
    Wgh = jnp.concatenate([p["Wrh"], p["Wzh"], p["Wnh"]], axis=1)              # (H,3H)
    bg = jnp.concatenate([p["br"], p["bz"], p["bn"]], axis=1).astype(f32)      # (1,3H)
    Wax = jnp.concatenate([p["Wa"], p["Wxh"]], axis=1)                         # (H,2S)
    bax = jnp.concatenate([p["ba"], p["bxh"]], axis=1).astype(f32)             # (1,2S)
    At = p["A"].T.astype(f32)                                                  # (S,S)

    # bf16 weights for the recurrent MXU dots; f32 for the VPU x-term path.
    Wgx = Wgx if S <= 8 else Wgx.astype(bf16)
    Wgh = Wgh.astype(bf16)
    Wax = Wax.astype(bf16)

    # ---- time-major inputs, batch padded to 8 sublanes, T padded to chunks --
    Bp = _round_up(max(B, 1), 8)
    TC = max(1, min(t_chunk, T))
    Tp = _round_up(T, TC)

    rnn_tm = jnp.transpose(rnn_input, (1, 0, 2)).astype(f32)   # (T,B,In)
    tau_tm = jnp.transpose(tau, (1, 0, 2)).astype(f32)         # (T,B,1)
    x0 = hidden_state[0, :, :S].astype(f32)                    # (B,S)
    h0 = hidden_state[0, :, S:].astype(f32)                    # (B,H)
    rnn_tm = jnp.pad(rnn_tm, ((0, Tp - T), (0, Bp - B), (0, 0)))
    tau_tm = jnp.pad(tau_tm, ((0, Tp - T), (0, Bp - B), (0, 0)))
    x0 = jnp.pad(x0, ((0, Bp - B), (0, 0)))
    h0 = jnp.pad(h0, ((0, Bp - B), (0, 0)))

    # ---- hoisted input projection (one big matmul), bias folded, tau appended
    ug = jnp.einsum("tbi,io->tbo", rnn_tm, Wgu,
                    preferred_element_type=f32) + bg[None]      # (Tp,Bp,3H)
    ug_tau = jnp.concatenate([ug, tau_tm], axis=-1)             # (Tp,Bp,3H+1)
    GW = 3 * H + 1

    OUTW = 2 * S + H
    P = _round_up(OUTW, 128)       # lane-dense output slab width

    flops = int(2 * Tp * Bp * (3 * H * (S + H) + 2 * H * S + S * S)
                + 14 * Tp * Bp * H)
    transcendentals = int(Tp * Bp * (3 * H + S))
    bytes_accessed = int(4 * (Tp * Bp * (GW + P) + Bp * (S + H) + S * S + 2 * S)
                         + 2 * ((S + H) * 3 * H + H * 2 * S))
    cost = pl.CostEstimate(flops=flops, transcendentals=transcendentals,
                           bytes_accessed=bytes_accessed)

    grid_spec = pltpu.PrefetchScalarGridSpec(
        num_scalar_prefetch=0,
        grid=(Tp // TC,),
        in_specs=[
            pl.BlockSpec((TC, Bp, GW), lambda i: (i, 0, 0)),   # streamed slab
            pl.BlockSpec((Bp, S), lambda i: (0, 0)),
            pl.BlockSpec((Bp, H), lambda i: (0, 0)),
            pl.BlockSpec((S, 3 * H), lambda i: (0, 0)),
            pl.BlockSpec((H, 3 * H), lambda i: (0, 0)),
            pl.BlockSpec((H, 2 * S), lambda i: (0, 0)),
            pl.BlockSpec((1, 2 * S), lambda i: (0, 0)),
            pl.BlockSpec((S, S), lambda i: (0, 0)),
        ],
        out_specs=pl.BlockSpec((TC, Bp, P), lambda i: (i, 0, 0)),
        scratch_shapes=[
            pltpu.VMEM((Bp, S), jnp.float32),   # x carry
            pltpu.VMEM((Bp, H), jnp.float32),   # h carry
        ],
    )

    out = pl.pallas_call(
        _gru_chunk_kernel,
        out_shape=jax.ShapeDtypeStruct((Tp, Bp, P), jnp.float32),
        grid_spec=grid_spec,
        compiler_params=pltpu.CompilerParams(
            dimension_semantics=("arbitrary",),   # sequential carry over time
        ),
        cost_estimate=cost,
    )(ug_tau, x0, h0, Wgx, Wgh, Wax, bax, At)

    # ---- single post-kernel transpose of the fused slab, then cheap slices --
    out_bt = jnp.transpose(out, (1, 0, 2))[:B, :T]     # (B, T, P)
    outputs = out_bt[..., :z_size]                     # (B, T, z_size)
    coefficients = out_bt[..., z_size:z_size + S]      # (B, T, S)
    z_final = out_bt[:, T - 1, :z_size][None]          # (1, B, z_size)
    return outputs, z_final, coefficients


def _reference(rnn_input, hidden_state, tau, p, *, state_dim, hidden_size):
    """Pure-JAX f32 reference of the module math (split weights)."""
    B, T, _ = rnn_input.shape
    S, H = state_dim, hidden_size
    x = hidden_state[0, :, :S]
    h = hidden_state[0, :, S:]
    outs, coeffs = [], []
    for t in range(T):
        u = rnn_input[:, t, :]
        tau_t = tau[:, t, :]
        pre = lambda wx, wu, wh, b: x @ wx + u @ wu + h @ wh + b
        r = jax.nn.sigmoid(pre(p["Wrx"], p["Wru"], p["Wrh"], p["br"]))
        zg = jax.nn.sigmoid(pre(p["Wzx"], p["Wzu"], p["Wzh"], p["bz"]))
        n = jnp.tanh(pre(p["Wnx"], p["Wnu"], p["Wnh"], p["bn"]) + r * h)
        h_new = (1 - zg) * n + zg * h
        x_mid = x + tau_t * (x @ p["A"].T)
        alpha = jax.nn.sigmoid(h_new @ p["Wa"] + p["ba"])
        x_hat = h_new @ p["Wxh"] + p["bxh"]
        x = (1 - alpha) * x_mid + alpha * x_hat
        h = h_new
        outs.append(jnp.concatenate([x, h], axis=-1))
        coeffs.append(alpha)
    return (jnp.stack(outs, axis=1),
            jnp.concatenate([x, h], axis=-1)[None],
            jnp.stack(coeffs, axis=1))


if __name__ == "__main__":
    # small shapes consistent with the module
    batch, seq_len = 4, 8
    input_size, state_dim, hidden_size = 3, 2, 32
    z_size = state_dim + hidden_size

    key = jax.random.PRNGKey(0)
    ks = jax.random.split(key, 24)
    nrm = lambda k, shp, sc=0.1: (sc * jax.random.normal(k, shp)).astype(jnp.float32)

    params = {
        "A": jnp.array([[0.0, 1.0], [-1.0, 0.5]], dtype=jnp.float32),  # synthetic dynamics
        # r / z / n gate weights (split view of the single WU Linear)
        "Wrx": nrm(ks[0], (state_dim, hidden_size)),
        "Wru": nrm(ks[1], (input_size, hidden_size)),
        "Wrh": nrm(ks[2], (hidden_size, hidden_size)),
        "br":  nrm(ks[3], (1, hidden_size)),
        "Wzx": nrm(ks[4], (state_dim, hidden_size)),
        "Wzu": nrm(ks[5], (input_size, hidden_size)),
        "Wzh": nrm(ks[6], (hidden_size, hidden_size)),
        "bz":  nrm(ks[7], (1, hidden_size)),
        "Wnx": nrm(ks[8], (state_dim, hidden_size)),
        "Wnu": nrm(ks[9], (input_size, hidden_size)),
        "Wnh": nrm(ks[10], (hidden_size, hidden_size)),
        "bn":  nrm(ks[11], (1, hidden_size)),
        # alpha_gate and W__h_to_x
        "Wa":  nrm(ks[12], (hidden_size, state_dim)),
        "ba":  nrm(ks[13], (1, state_dim)),
        "Wxh": nrm(ks[14], (hidden_size, state_dim)),
        "bxh": nrm(ks[15], (1, state_dim)),
    }

    rnn_input = nrm(ks[16], (batch, seq_len, input_size), 1.0)
    hidden_state = nrm(ks[17], (1, batch, z_size), 1.0)
    tau = jnp.abs(nrm(ks[18], (batch, seq_len, 1), 0.05)) + 0.01

    outputs, z_final, coefficients = gru_forward(
        rnn_input, hidden_state, tau, params,
        state_dim=state_dim, hidden_size=hidden_size, t_chunk=4,
    )
    jax.block_until_ready((outputs, z_final, coefficients))

    ref_out, ref_z, ref_c = _reference(
        rnn_input, hidden_state, tau, params,
        state_dim=state_dim, hidden_size=hidden_size,
    )

    # bf16 recurrent matmuls introduce ~1e-3-level deviations vs. the f32
    # reference after the 8-step recurrence; 2e-2 still catches wiring bugs.
    def _check(name, a, b, atol=2e-2):
        err = float(jnp.max(jnp.abs(a - b)))
        assert err <= atol, f"{name} mismatch, max abs err = {err}"

    _check("outputs", outputs, ref_out)
    _check("final state", z_final, ref_z)
    _check("coefficients", coefficients, ref_c)

    print("KERNEL_OK")
</pallas_src>

<mosaic_0001>
module attributes {stable_mosaic.version = 11 : i64} {
  func.func @_gru_chunk_kernel(%arg0: i32, %arg1: memref<4x8x97xf32, #tpu.memory_space<vmem>>, %arg2: memref<8x2xf32, #tpu.memory_space<vmem>>, %arg3: memref<8x32xf32, #tpu.memory_space<vmem>>, %arg4: memref<2x96xf32, #tpu.memory_space<vmem>>, %arg5: memref<32x96xbf16, #tpu.memory_space<vmem>>, %arg6: memref<32x4xbf16, #tpu.memory_space<vmem>>, %arg7: memref<1x4xf32, #tpu.memory_space<vmem>>, %arg8: memref<2x2xf32, #tpu.memory_space<vmem>>, %arg9: memref<4x8x128xf32, #tpu.memory_space<vmem>>, %arg10: memref<8x2xf32, #tpu.memory_space<vmem>>, %arg11: memref<8x32xf32, #tpu.memory_space<vmem>>) attributes {dimension_semantics = [#tpu.dimension_semantics<arbitrary>], iteration_bounds = array<i64: 2>, scalar_prefetch = 0 : i64, scratch_operands = 2 : i64, tpu.core_type = #tpu.core_type<tc>, window_params = [{transform_indices = @transform_0, window_bounds = array<i64: 4, 8, 97>}, {pipeline_mode = #tpu.pipeline_mode<synchronous>, transform_indices = @transform_1, window_bounds = array<i64: 8, 2>}, {pipeline_mode = #tpu.pipeline_mode<synchronous>, transform_indices = @transform_2, window_bounds = array<i64: 8, 32>}, {pipeline_mode = #tpu.pipeline_mode<synchronous>, transform_indices = @transform_3, window_bounds = array<i64: 2, 96>}, {pipeline_mode = #tpu.pipeline_mode<synchronous>, transform_indices = @transform_4, window_bounds = array<i64: 32, 96>}, {pipeline_mode = #tpu.pipeline_mode<synchronous>, transform_indices = @transform_5, window_bounds = array<i64: 32, 4>}, {pipeline_mode = #tpu.pipeline_mode<synchronous>, transform_indices = @transform_6, window_bounds = array<i64: 1, 4>}, {pipeline_mode = #tpu.pipeline_mode<synchronous>, transform_indices = @transform_7, window_bounds = array<i64: 2, 2>}, {transform_indices = @transform_8, window_bounds = array<i64: 4, 8, 128>}]} {
    %c0_i32 = arith.constant 0 : i32
    %0 = arith.cmpi eq, %arg0, %c0_i32 : i32
    %1 = arith.extui %0 : i1 to i32
    %c0_i32_0 = arith.constant 0 : i32
    %2 = arith.cmpi ne, %1, %c0_i32_0 : i32
    scf.if %2 {
      %c0_63 = arith.constant 0 : index
      %c0_64 = arith.constant 0 : index
      %315 = vector.load %arg2[%c0_63, %c0_64] : memref<8x2xf32, #tpu.memory_space<vmem>>, vector<8x2xf32>
      %c0_65 = arith.constant 0 : index
      %c0_66 = arith.constant 0 : index
      %316 = vector.load %arg10[%c0_65, %c0_66] : memref<8x2xf32, #tpu.memory_space<vmem>>, vector<8x2xf32>
      tpu.vector_store %arg10[%c0_65, %c0_66], %315 {strides = array<i32>} : memref<8x2xf32, #tpu.memory_space<vmem>>, vector<8x2xf32>,
      %c0_67 = arith.constant 0 : index
      %c0_68 = arith.constant 0 : index
      %317 = vector.load %arg3[%c0_67, %c0_68] : memref<8x32xf32, #tpu.memory_space<vmem>>, vector<8x32xf32>
      %c0_69 = arith.constant 0 : index
      %c0_70 = arith.constant 0 : index
      %318 = vector.load %arg11[%c0_69, %c0_70] : memref<8x32xf32, #tpu.memory_space<vmem>>, vector<8x32xf32>
      tpu.vector_store %arg11[%c0_69, %c0_70], %317 {strides = array<i32>} : memref<8x32xf32, #tpu.memory_space<vmem>>, vector<8x32xf32>,
    } else {
    }
    %c0 = arith.constant 0 : index
    %c0_1 = arith.constant 0 : index
    %3 = vector.load %arg4[%c0, %c0_1] : memref<2x96xf32, #tpu.memory_space<vmem>>, vector<2x96xf32>
    %c0_2 = arith.constant 0 : index
    %c0_3 = arith.constant 0 : index
    %4 = vector.load %arg5[%c0_2, %c0_3] : memref<32x96xbf16, #tpu.memory_space<vmem>>, vector<32x96xbf16>
    %c0_4 = arith.constant 0 : index
    %c0_5 = arith.constant 0 : index
    %5 = vector.load %arg6[%c0_4, %c0_5] : memref<32x4xbf16, #tpu.memory_space<vmem>>, vector<32x4xbf16>
    %c0_6 = arith.constant 0 : index
    %c0_7 = arith.constant 0 : index
    %6 = vector.load %arg8[%c0_6, %c0_7] : memref<2x2xf32, #tpu.memory_space<vmem>>, vector<2x2xf32>
    %c0_8 = arith.constant 0 : index
    %c0_9 = arith.constant 0 : index
    %7 = vector.load %arg7[%c0_8, %c0_9] : memref<1x4xf32, #tpu.memory_space<vmem>>, vector<1x4xf32>
    %8 = vector.shape_cast %7 : vector<1x4xf32> to vector<1x4xf32>
    %9 = vector.broadcast %8 : vector<1x4xf32> to vector<8x4xf32>
    %cst = arith.constant 0.000000e+00 : f32
    %10 = vector.broadcast %cst : f32 to vector<8x92xf32>
    %c0_10 = arith.constant 0 : index
    %c0_11 = arith.constant 0 : index
    %11 = vector.load %arg10[%c0_10, %c0_11] : memref<8x2xf32, #tpu.memory_space<vmem>>, vector<8x2xf32>
    %c0_12 = arith.constant 0 : index
    %c0_13 = arith.constant 0 : index
    %12 = vector.load %arg11[%c0_12, %c0_13] : memref<8x32xf32, #tpu.memory_space<vmem>>, vector<8x32xf32>
    %c0_i32_14 = arith.constant 0 : i32
    %13 = arith.index_cast %c0_i32_14 : i32 to index
    %c0_15 = arith.constant 0 : index
    %c0_16 = arith.constant 0 : index
    %14 = vector.load %arg1[%13, %c0_15, %c0_16] : memref<4x8x97xf32, #tpu.memory_space<vmem>>, vector<1x8x97xf32>
    %15 = vector.shape_cast %14 : vector<1x8x97xf32> to vector<8x97xf32>
    %16 = vector.extract_strided_slice %15 {offsets = [0, 0], sizes = [8, 96], strides = [1, 1]} : vector<8x97xf32> to vector<8x96xf32>
    %17 = vector.extract_strided_slice %15 {offsets = [0, 96], sizes = [8, 1], strides = [1, 1]} : vector<8x97xf32> to vector<8x1xf32>
    %18 = vector.extract_strided_slice %11 {offsets = [0, 0], sizes = [8, 1], strides = [1, 1]} : vector<8x2xf32> to vector<8x1xf32>
    %19 = vector.extract_strided_slice %3 {offsets = [0, 0], sizes = [1, 96], strides = [1, 1]} : vector<2x96xf32> to vector<1x96xf32>
    %20 = vector.broadcast %18 : vector<8x1xf32> to vector<8x96xf32>
    %21 = vector.broadcast %19 : vector<1x96xf32> to vector<8x96xf32>
    %22 = arith.mulf %20, %21 : vector<8x96xf32>
    %23 = vector.extract_strided_slice %11 {offsets = [0, 1], sizes = [8, 1], strides = [1, 1]} : vector<8x2xf32> to vector<8x1xf32>
    %24 = vector.extract_strided_slice %3 {offsets = [1, 0], sizes = [1, 96], strides = [1, 1]} : vector<2x96xf32> to vector<1x96xf32>
    %25 = vector.broadcast %23 : vector<8x1xf32> to vector<8x96xf32>
    %26 = vector.broadcast %24 : vector<1x96xf32> to vector<8x96xf32>
    %27 = arith.mulf %25, %26 : vector<8x96xf32>
    %28 = arith.addf %22, %27 : vector<8x96xf32>
    %29 = arith.truncf %12 : vector<8x32xf32> to vector<8x32xbf16>
    %cst_17 = arith.constant dense<0.000000e+00> : vector<8x96xf32>
    %30 = tpu.matmul %29, %4, %cst_17 {dimension_numbers = #tpu.dot_dimension_numbers<[1], [0], [0], [1], [0, 0, 1, 1], [], []>} : vector<8x32xbf16>, vector<32x96xbf16>, vector<8x96xf32> -> vector<8x96xf32>
    %31 = arith.addf %16, %28 : vector<8x96xf32>
    %32 = arith.addf %31, %30 : vector<8x96xf32>
    %33 = vector.extract_strided_slice %32 {offsets = [0, 0], sizes = [8, 32], strides = [1, 1]} : vector<8x96xf32> to vector<8x32xf32>
    %34 = arith.negf %33 : vector<8x32xf32>
    %35 = math.exp %34 : vector<8x32xf32>
    %cst_18 = arith.constant 1.000000e+00 : f32
    %36 = vector.broadcast %cst_18 : f32 to vector<8x32xf32>
    %37 = arith.addf %36, %35 : vector<8x32xf32>
    %38 = arith.divf %36, %37 : vector<8x32xf32>
    %39 = vector.extract_strided_slice %32 {offsets = [0, 32], sizes = [8, 32], strides = [1, 1]} : vector<8x96xf32> to vector<8x32xf32>
    %40 = arith.negf %39 : vector<8x32xf32>
    %41 = math.exp %40 : vector<8x32xf32>
    %cst_19 = arith.constant 1.000000e+00 : f32
    %42 = vector.broadcast %cst_19 : f32 to vector<8x32xf32>
    %43 = arith.addf %42, %41 : vector<8x32xf32>
    %44 = arith.divf %42, %43 : vector<8x32xf32>
    %45 = vector.extract_strided_slice %32 {offsets = [0, 64], sizes = [8, 32], strides = [1, 1]} : vector<8x96xf32> to vector<8x32xf32>
    %46 = arith.mulf %38, %12 : vector<8x32xf32>
    %47 = arith.addf %45, %46 : vector<8x32xf32>
    %48 = math.tanh %47 : vector<8x32xf32>
    %cst_20 = arith.constant 1.000000e+00 : f32
    %49 = vector.broadcast %cst_20 : f32 to vector<8x32xf32>
    %50 = arith.subf %49, %44 : vector<8x32xf32>
    %51 = arith.mulf %50, %48 : vector<8x32xf32>
    %52 = arith.mulf %44, %12 : vector<8x32xf32>
    %53 = arith.addf %51, %52 : vector<8x32xf32>
    %54 = vector.extract_strided_slice %11 {offsets = [0, 0], sizes = [8, 1], strides = [1, 1]} : vector<8x2xf32> to vector<8x1xf32>
    %55 = vector.extract_strided_slice %6 {offsets = [0, 0], sizes = [1, 2], strides = [1, 1]} : vector<2x2xf32> to vector<1x2xf32>
    %56 = vector.broadcast %54 : vector<8x1xf32> to vector<8x2xf32>
    %57 = vector.broadcast %55 : vector<1x2xf32> to vector<8x2xf32>
    %58 = arith.mulf %56, %57 : vector<8x2xf32>
    %59 = vector.extract_strided_slice %11 {offsets = [0, 1], sizes = [8, 1], strides = [1, 1]} : vector<8x2xf32> to vector<8x1xf32>
    %60 = vector.extract_strided_slice %6 {offsets = [1, 0], sizes = [1, 2], strides = [1, 1]} : vector<2x2xf32> to vector<1x2xf32>
    %61 = vector.broadcast %59 : vector<8x1xf32> to vector<8x2xf32>
    %62 = vector.broadcast %60 : vector<1x2xf32> to vector<8x2xf32>
    %63 = arith.mulf %61, %62 : vector<8x2xf32>
    %64 = arith.addf %58, %63 : vector<8x2xf32>
    %65 = vector.broadcast %17 : vector<8x1xf32> to vector<8x2xf32>
    %66 = arith.mulf %65, %64 : vector<8x2xf32>
    %67 = arith.addf %11, %66 : vector<8x2xf32>
    %68 = arith.truncf %53 : vector<8x32xf32> to vector<8x32xbf16>
    %cst_21 = arith.constant dense<0.000000e+00> : vector<8x4xf32>
    %69 = tpu.matmul %68, %5, %cst_21 {dimension_numbers = #tpu.dot_dimension_numbers<[1], [0], [0], [1], [0, 0, 1, 1], [], []>} : vector<8x32xbf16>, vector<32x4xbf16>, vector<8x4xf32> -> vector<8x4xf32>
    %70 = arith.addf %69, %9 : vector<8x4xf32>
    %71 = vector.extract_strided_slice %70 {offsets = [0, 0], sizes = [8, 2], strides = [1, 1]} : vector<8x4xf32> to vector<8x2xf32>
    %72 = arith.negf %71 : vector<8x2xf32>
    %73 = math.exp %72 : vector<8x2xf32>
    %cst_22 = arith.constant 1.000000e+00 : f32
    %74 = vector.broadcast %cst_22 : f32 to vector<8x2xf32>
    %75 = arith.addf %74, %73 : vector<8x2xf32>
    %76 = arith.divf %74, %75 : vector<8x2xf32>
    %77 = vector.extract_strided_slice %70 {offsets = [0, 2], sizes = [8, 2], strides = [1, 1]} : vector<8x4xf32> to vector<8x2xf32>
    %cst_23 = arith.constant 1.000000e+00 : f32
    %78 = vector.broadcast %cst_23 : f32 to vector<8x2xf32>
    %79 = arith.subf %78, %76 : vector<8x2xf32>
    %80 = arith.mulf %79, %67 : vector<8x2xf32>
    %81 = arith.mulf %76, %77 : vector<8x2xf32>
    %82 = arith.addf %80, %81 : vector<8x2xf32>
    %83 = tpu.concatenate %82, %53, %76, %10 in 1 : vector<8x2xf32>, vector<8x32xf32>, vector<8x2xf32>, vector<8x92xf32> -> vector<8x128xf32>
    %84 = arith.index_cast %c0_i32_14 : i32 to index
    %c0_24 = arith.constant 0 : index
    %c0_25 = arith.constant 0 : index
    %85 = vector.load %arg9[%84, %c0_24, %c0_25] : memref<4x8x128xf32, #tpu.memory_space<vmem>>, vector<1x8x128xf32>
    %86 = vector.shape_cast %85 : vector<1x8x128xf32> to vector<8x128xf32>
    %87 = vector.shape_cast %83 : vector<8x128xf32> to vector<1x8x128xf32>
    tpu.vector_store %arg9[%84, %c0_24, %c0_25], %87 {strides = array<i32>} : memref<4x8x128xf32, #tpu.memory_space<vmem>>, vector<1x8x128xf32>,
    %c1_i32 = arith.constant 1 : i32
    %88 = arith.index_cast %c1_i32 : i32 to index
    %c0_26 = arith.constant 0 : index
    %c0_27 = arith.constant 0 : index
    %89 = vector.load %arg1[%88, %c0_26, %c0_27] : memref<4x8x97xf32, #tpu.memory_space<vmem>>, vector<1x8x97xf32>
    %90 = vector.shape_cast %89 : vector<1x8x97xf32> to vector<8x97xf32>
    %91 = vector.extract_strided_slice %90 {offsets = [0, 0], sizes = [8, 96], strides = [1, 1]} : vector<8x97xf32> to vector<8x96xf32>
    %92 = vector.extract_strided_slice %90 {offsets = [0, 96], sizes = [8, 1], strides = [1, 1]} : vector<8x97xf32> to vector<8x1xf32>
    %93 = vector.extract_strided_slice %82 {offsets = [0, 0], sizes = [8, 1], strides = [1, 1]} : vector<8x2xf32> to vector<8x1xf32>
    %94 = vector.extract_strided_slice %3 {offsets = [0, 0], sizes = [1, 96], strides = [1, 1]} : vector<2x96xf32> to vector<1x96xf32>
    %95 = vector.broadcast %93 : vector<8x1xf32> to vector<8x96xf32>
    %96 = vector.broadcast %94 : vector<1x96xf32> to vector<8x96xf32>
    %97 = arith.mulf %95, %96 : vector<8x96xf32>
    %98 = vector.extract_strided_slice %82 {offsets = [0, 1], sizes = [8, 1], strides = [1, 1]} : vector<8x2xf32> to vector<8x1xf32>
    %99 = vector.extract_strided_slice %3 {offsets = [1, 0], sizes = [1, 96], strides = [1, 1]} : vector<2x96xf32> to vector<1x96xf32>
    %100 = vector.broadcast %98 : vector<8x1xf32> to vector<8x96xf32>
    %101 = vector.broadcast %99 : vector<1x96xf32> to vector<8x96xf32>
    %102 = arith.mulf %100, %101 : vector<8x96xf32>
    %103 = arith.addf %97, %102 : vector<8x96xf32>
    %104 = arith.truncf %53 : vector<8x32xf32> to vector<8x32xbf16>
    %cst_28 = arith.constant dense<0.000000e+00> : vector<8x96xf32>
    %105 = tpu.matmul %104, %4, %cst_28 {dimension_numbers = #tpu.dot_dimension_numbers<[1], [0], [0], [1], [0, 0, 1, 1], [], []>} : vector<8x32xbf16>, vector<32x96xbf16>, vector<8x96xf32> -> vector<8x96xf32>
    %106 = arith.addf %91, %103 : vector<8x96xf32>
    %107 = arith.addf %106, %105 : vector<8x96xf32>
    %108 = vector.extract_strided_slice %107 {offsets = [0, 0], sizes = [8, 32], strides = [1, 1]} : vector<8x96xf32> to vector<8x32xf32>
    %109 = arith.negf %108 : vector<8x32xf32>
    %110 = math.exp %109 : vector<8x32xf32>
    %cst_29 = arith.constant 1.000000e+00 : f32
    %111 = vector.broadcast %cst_29 : f32 to vector<8x32xf32>
    %112 = arith.addf %111, %110 : vector<8x32xf32>
    %113 = arith.divf %111, %112 : vector<8x32xf32>
    %114 = vector.extract_strided_slice %107 {offsets = [0, 32], sizes = [8, 32], strides = [1, 1]} : vector<8x96xf32> to vector<8x32xf32>
    %115 = arith.negf %114 : vector<8x32xf32>
    %116 = math.exp %115 : vector<8x32xf32>
    %cst_30 = arith.constant 1.000000e+00 : f32
    %117 = vector.broadcast %cst_30 : f32 to vector<8x32xf32>
    %118 = arith.addf %117, %116 : vector<8x32xf32>
    %119 = arith.divf %117, %118 : vector<8x32xf32>
    %120 = vector.extract_strided_slice %107 {offsets = [0, 64], sizes = [8, 32], strides = [1, 1]} : vector<8x96xf32> to vector<8x32xf32>
    %121 = arith.mulf %113, %53 : vector<8x32xf32>
    %122 = arith.addf %120, %121 : vector<8x32xf32>
    %123 = math.tanh %122 : vector<8x32xf32>
    %cst_31 = arith.constant 1.000000e+00 : f32
    %124 = vector.broadcast %cst_31 : f32 to vector<8x32xf32>
    %125 = arith.subf %124, %119 : vector<8x32xf32>
    %126 = arith.mulf %125, %123 : vector<8x32xf32>
    %127 = arith.mulf %119, %53 : vector<8x32xf32>
    %128 = arith.addf %126, %127 : vector<8x32xf32>
    %129 = vector.extract_strided_slice %82 {offsets = [0, 0], sizes = [8, 1], strides = [1, 1]} : vector<8x2xf32> to vector<8x1xf32>
    %130 = vector.extract_strided_slice %6 {offsets = [0, 0], sizes = [1, 2], strides = [1, 1]} : vector<2x2xf32> to vector<1x2xf32>
    %131 = vector.broadcast %129 : vector<8x1xf32> to vector<8x2xf32>
    %132 = vector.broadcast %130 : vector<1x2xf32> to vector<8x2xf32>
    %133 = arith.mulf %131, %132 : vector<8x2xf32>
    %134 = vector.extract_strided_slice %82 {offsets = [0, 1], sizes = [8, 1], strides = [1, 1]} : vector<8x2xf32> to vector<8x1xf32>
    %135 = vector.extract_strided_slice %6 {offsets = [1, 0], sizes = [1, 2], strides = [1, 1]} : vector<2x2xf32> to vector<1x2xf32>
    %136 = vector.broadcast %134 : vector<8x1xf32> to vector<8x2xf32>
    %137 = vector.broadcast %135 : vector<1x2xf32> to vector<8x2xf32>
    %138 = arith.mulf %136, %137 : vector<8x2xf32>
    %139 = arith.addf %133, %138 : vector<8x2xf32>
    %140 = vector.broadcast %92 : vector<8x1xf32> to vector<8x2xf32>
    %141 = arith.mulf %140, %139 : vector<8x2xf32>
    %142 = arith.addf %82, %141 : vector<8x2xf32>
    %143 = arith.truncf %128 : vector<8x32xf32> to vector<8x32xbf16>
    %cst_32 = arith.constant dense<0.000000e+00> : vector<8x4xf32>
    %144 = tpu.matmul %143, %5, %cst_32 {dimension_numbers = #tpu.dot_dimension_numbers<[1], [0], [0], [1], [0, 0, 1, 1], [], []>} : vector<8x32xbf16>, vector<32x4xbf16>, vector<8x4xf32> -> vector<8x4xf32>
    %145 = arith.addf %144, %9 : vector<8x4xf32>
    %146 = vector.extract_strided_slice %145 {offsets = [0, 0], sizes = [8, 2], strides = [1, 1]} : vector<8x4xf32> to vector<8x2xf32>
    %147 = arith.negf %146 : vector<8x2xf32>
    %148 = math.exp %147 : vector<8x2xf32>
    %cst_33 = arith.constant 1.000000e+00 : f32
    %149 = vector.broadcast %cst_33 : f32 to vector<8x2xf32>
    %150 = arith.addf %149, %148 : vector<8x2xf32>
    %151 = arith.divf %149, %150 : vector<8x2xf32>
    %152 = vector.extract_strided_slice %145 {offsets = [0, 2], sizes = [8, 2], strides = [1, 1]} : vector<8x4xf32> to vector<8x2xf32>
    %cst_34 = arith.constant 1.000000e+00 : f32
    %153 = vector.broadcast %cst_34 : f32 to vector<8x2xf32>
    %154 = arith.subf %153, %151 : vector<8x2xf32>
    %155 = arith.mulf %154, %142 : vector<8x2xf32>
    %156 = arith.mulf %151, %152 : vector<8x2xf32>
    %157 = arith.addf %155, %156 : vector<8x2xf32>
    %158 = tpu.concatenate %157, %128, %151, %10 in 1 : vector<8x2xf32>, vector<8x32xf32>, vector<8x2xf32>, vector<8x92xf32> -> vector<8x128xf32>
    %159 = arith.index_cast %c1_i32 : i32 to index
    %c0_35 = arith.constant 0 : index
    %c0_36 = arith.constant 0 : index
    %160 = vector.load %arg9[%159, %c0_35, %c0_36] : memref<4x8x128xf32, #tpu.memory_space<vmem>>, vector<1x8x128xf32>
    %161 = vector.shape_cast %160 : vector<1x8x128xf32> to vector<8x128xf32>
    %162 = vector.shape_cast %158 : vector<8x128xf32> to vector<1x8x128xf32>
    tpu.vector_store %arg9[%159, %c0_35, %c0_36], %162 {strides = array<i32>} : memref<4x8x128xf32, #tpu.memory_space<vmem>>, vector<1x8x128xf32>,
    %c2_i32 = arith.constant 2 : i32
    %163 = arith.index_cast %c2_i32 : i32 to index
    %c0_37 = arith.constant 0 : index
    %c0_38 = arith.constant 0 : index
    %164 = vector.load %arg1[%163, %c0_37, %c0_38] : memref<4x8x97xf32, #tpu.memory_space<vmem>>, vector<1x8x97xf32>
    %165 = vector.shape_cast %164 : vector<1x8x97xf32> to vector<8x97xf32>
    %166 = vector.extract_strided_slice %165 {offsets = [0, 0], sizes = [8, 96], strides = [1, 1]} : vector<8x97xf32> to vector<8x96xf32>
    %167 = vector.extract_strided_slice %165 {offsets = [0, 96], sizes = [8, 1], strides = [1, 1]} : vector<8x97xf32> to vector<8x1xf32>
    %168 = vector.extract_strided_slice %157 {offsets = [0, 0], sizes = [8, 1], strides = [1, 1]} : vector<8x2xf32> to vector<8x1xf32>
    %169 = vector.extract_strided_slice %3 {offsets = [0, 0], sizes = [1, 96], strides = [1, 1]} : vector<2x96xf32> to vector<1x96xf32>
    %170 = vector.broadcast %168 : vector<8x1xf32> to vector<8x96xf32>
    %171 = vector.broadcast %169 : vector<1x96xf32> to vector<8x96xf32>
    %172 = arith.mulf %170, %171 : vector<8x96xf32>
    %173 = vector.extract_strided_slice %157 {offsets = [0, 1], sizes = [8, 1], strides = [1, 1]} : vector<8x2xf32> to vector<8x1xf32>
    %174 = vector.extract_strided_slice %3 {offsets = [1, 0], sizes = [1, 96], strides = [1, 1]} : vector<2x96xf32> to vector<1x96xf32>
    %175 = vector.broadcast %173 : vector<8x1xf32> to vector<8x96xf32>
    %176 = vector.broadcast %174 : vector<1x96xf32> to vector<8x96xf32>
    %177 = arith.mulf %175, %176 : vector<8x96xf32>
    %178 = arith.addf %172, %177 : vector<8x96xf32>
    %179 = arith.truncf %128 : vector<8x32xf32> to vector<8x32xbf16>
    %cst_39 = arith.constant dense<0.000000e+00> : vector<8x96xf32>
    %180 = tpu.matmul %179, %4, %cst_39 {dimension_numbers = #tpu.dot_dimension_numbers<[1], [0], [0], [1], [0, 0, 1, 1], [], []>} : vector<8x32xbf16>, vector<32x96xbf16>, vector<8x96xf32> -> vector<8x96xf32>
    %181 = arith.addf %166, %178 : vector<8x96xf32>
    %182 = arith.addf %181, %180 : vector<8x96xf32>
    %183 = vector.extract_strided_slice %182 {offsets = [0, 0], sizes = [8, 32], strides = [1, 1]} : vector<8x96xf32> to vector<8x32xf32>
    %184 = arith.negf %183 : vector<8x32xf32>
    %185 = math.exp %184 : vector<8x32xf32>
    %cst_40 = arith.constant 1.000000e+00 : f32
    %186 = vector.broadcast %cst_40 : f32 to vector<8x32xf32>
    %187 = arith.addf %186, %185 : vector<8x32xf32>
    %188 = arith.divf %186, %187 : vector<8x32xf32>
    %189 = vector.extract_strided_slice %182 {offsets = [0, 32], sizes = [8, 32], strides = [1, 1]} : vector<8x96xf32> to vector<8x32xf32>
    %190 = arith.negf %189 : vector<8x32xf32>
    %191 = math.exp %190 : vector<8x32xf32>
    %cst_41 = arith.constant 1.000000e+00 : f32
    %192 = vector.broadcast %cst_41 : f32 to vector<8x32xf32>
    %193 = arith.addf %192, %191 : vector<8x32xf32>
    %194 = arith.divf %192, %193 : vector<8x32xf32>
    %195 = vector.extract_strided_slice %182 {offsets = [0, 64], sizes = [8, 32], strides = [1, 1]} : vector<8x96xf32> to vector<8x32xf32>
    %196 = arith.mulf %188, %128 : vector<8x32xf32>
    %197 = arith.addf %195, %196 : vector<8x32xf32>
    %198 = math.tanh %197 : vector<8x32xf32>
    %cst_42 = arith.constant 1.000000e+00 : f32
    %199 = vector.broadcast %cst_42 : f32 to vector<8x32xf32>
    %200 = arith.subf %199, %194 : vector<8x32xf32>
    %201 = arith.mulf %200, %198 : vector<8x32xf32>
    %202 = arith.mulf %194, %128 : vector<8x32xf32>
    %203 = arith.addf %201, %202 : vector<8x32xf32>
    %204 = vector.extract_strided_slice %157 {offsets = [0, 0], sizes = [8, 1], strides = [1, 1]} : vector<8x2xf32> to vector<8x1xf32>
    %205 = vector.extract_strided_slice %6 {offsets = [0, 0], sizes = [1, 2], strides = [1, 1]} : vector<2x2xf32> to vector<1x2xf32>
    %206 = vector.broadcast %204 : vector<8x1xf32> to vector<8x2xf32>
    %207 = vector.broadcast %205 : vector<1x2xf32> to vector<8x2xf32>
    %208 = arith.mulf %206, %207 : vector<8x2xf32>
    %209 = vector.extract_strided_slice %157 {offsets = [0, 1], sizes = [8, 1], strides = [1, 1]} : vector<8x2xf32> to vector<8x1xf32>
    %210 = vector.extract_strided_slice %6 {offsets = [1, 0], sizes = [1, 2], strides = [1, 1]} : vector<2x2xf32> to vector<1x2xf32>
    %211 = vector.broadcast %209 : vector<8x1xf32> to vector<8x2xf32>
    %212 = vector.broadcast %210 : vector<1x2xf32> to vector<8x2xf32>
    %213 = arith.mulf %211, %212 : vector<8x2xf32>
    %214 = arith.addf %208, %213 : vector<8x2xf32>
    %215 = vector.broadcast %167 : vector<8x1xf32> to vector<8x2xf32>
    %216 = arith.mulf %215, %214 : vector<8x2xf32>
    %217 = arith.addf %157, %216 : vector<8x2xf32>
    %218 = arith.truncf %203 : vector<8x32xf32> to vector<8x32xbf16>
    %cst_43 = arith.constant dense<0.000000e+00> : vector<8x4xf32>
    %219 = tpu.matmul %218, %5, %cst_43 {dimension_numbers = #tpu.dot_dimension_numbers<[1], [0], [0], [1], [0, 0, 1, 1], [], []>} : vector<8x32xbf16>, vector<32x4xbf16>, vector<8x4xf32> -> vector<8x4xf32>
    %220 = arith.addf %219, %9 : vector<8x4xf32>
    %221 = vector.extract_strided_slice %220 {offsets = [0, 0], sizes = [8, 2], strides = [1, 1]} : vector<8x4xf32> to vector<8x2xf32>
    %222 = arith.negf %221 : vector<8x2xf32>
    %223 = math.exp %222 : vector<8x2xf32>
    %cst_44 = arith.constant 1.000000e+00 : f32
    %224 = vector.broadcast %cst_44 : f32 to vector<8x2xf32>
    %225 = arith.addf %224, %223 : vector<8x2xf32>
    %226 = arith.divf %224, %225 : vector<8x2xf32>
    %227 = vector.extract_strided_slice %220 {offsets = [0, 2], sizes = [8, 2], strides = [1, 1]} : vector<8x4xf32> to vector<8x2xf32>
    %cst_45 = arith.constant 1.000000e+00 : f32
    %228 = vector.broadcast %cst_45 : f32 to vector<8x2xf32>
    %229 = arith.subf %228, %226 : vector<8x2xf32>
    %230 = arith.mulf %229, %217 : vector<8x2xf32>
    %231 = arith.mulf %226, %227 : vector<8x2xf32>
    %232 = arith.addf %230, %231 : vector<8x2xf32>
    %233 = tpu.concatenate %232, %203, %226, %10 in 1 : vector<8x2xf32>, vector<8x32xf32>, vector<8x2xf32>, vector<8x92xf32> -> vector<8x128xf32>
    %234 = arith.index_cast %c2_i32 : i32 to index
    %c0_46 = arith.constant 0 : index
    %c0_47 = arith.constant 0 : index
    %235 = vector.load %arg9[%234, %c0_46, %c0_47] : memref<4x8x128xf32, #tpu.memory_space<vmem>>, vector<1x8x128xf32>
    %236 = vector.shape_cast %235 : vector<1x8x128xf32> to vector<8x128xf32>
    %237 = vector.shape_cast %233 : vector<8x128xf32> to vector<1x8x128xf32>
    tpu.vector_store %arg9[%234, %c0_46, %c0_47], %237 {strides = array<i32>} : memref<4x8x128xf32, #tpu.memory_space<vmem>>, vector<1x8x128xf32>,
    %c3_i32 = arith.constant 3 : i32
    %238 = arith.index_cast %c3_i32 : i32 to index
    %c0_48 = arith.constant 0 : index
    %c0_49 = arith.constant 0 : index
    %239 = vector.load %arg1[%238, %c0_48, %c0_49] : memref<4x8x97xf32, #tpu.memory_space<vmem>>, vector<1x8x97xf32>
    %240 = vector.shape_cast %239 : vector<1x8x97xf32> to vector<8x97xf32>
    %241 = vector.extract_strided_slice %240 {offsets = [0, 0], sizes = [8, 96], strides = [1, 1]} : vector<8x97xf32> to vector<8x96xf32>
    %242 = vector.extract_strided_slice %240 {offsets = [0, 96], sizes = [8, 1], strides = [1, 1]} : vector<8x97xf32> to vector<8x1xf32>
    %243 = vector.extract_strided_slice %232 {offsets = [0, 0], sizes = [8, 1], strides = [1, 1]} : vector<8x2xf32> to vector<8x1xf32>
    %244 = vector.extract_strided_slice %3 {offsets = [0, 0], sizes = [1, 96], strides = [1, 1]} : vector<2x96xf32> to vector<1x96xf32>
    %245 = vector.broadcast %243 : vector<8x1xf32> to vector<8x96xf32>
    %246 = vector.broadcast %244 : vector<1x96xf32> to vector<8x96xf32>
    %247 = arith.mulf %245, %246 : vector<8x96xf32>
    %248 = vector.extract_strided_slice %232 {offsets = [0, 1], sizes = [8, 1], strides = [1, 1]} : vector<8x2xf32> to vector<8x1xf32>
    %249 = vector.extract_strided_slice %3 {offsets = [1, 0], sizes = [1, 96], strides = [1, 1]} : vector<2x96xf32> to vector<1x96xf32>
    %250 = vector.broadcast %248 : vector<8x1xf32> to vector<8x96xf32>
    %251 = vector.broadcast %249 : vector<1x96xf32> to vector<8x96xf32>
    %252 = arith.mulf %250, %251 : vector<8x96xf32>
    %253 = arith.addf %247, %252 : vector<8x96xf32>
    %254 = arith.truncf %203 : vector<8x32xf32> to vector<8x32xbf16>
    %cst_50 = arith.constant dense<0.000000e+00> : vector<8x96xf32>
    %255 = tpu.matmul %254, %4, %cst_50 {dimension_numbers = #tpu.dot_dimension_numbers<[1], [0], [0], [1], [0, 0, 1, 1], [], []>} : vector<8x32xbf16>, vector<32x96xbf16>, vector<8x96xf32> -> vector<8x96xf32>
    %256 = arith.addf %241, %253 : vector<8x96xf32>
    %257 = arith.addf %256, %255 : vector<8x96xf32>
    %258 = vector.extract_strided_slice %257 {offsets = [0, 0], sizes = [8, 32], strides = [1, 1]} : vector<8x96xf32> to vector<8x32xf32>
    %259 = arith.negf %258 : vector<8x32xf32>
    %260 = math.exp %259 : vector<8x32xf32>
    %cst_51 = arith.constant 1.000000e+00 : f32
    %261 = vector.broadcast %cst_51 : f32 to vector<8x32xf32>
    %262 = arith.addf %261, %260 : vector<8x32xf32>
    %263 = arith.divf %261, %262 : vector<8x32xf32>
    %264 = vector.extract_strided_slice %257 {offsets = [0, 32], sizes = [8, 32], strides = [1, 1]} : vector<8x96xf32> to vector<8x32xf32>
    %265 = arith.negf %264 : vector<8x32xf32>
    %266 = math.exp %265 : vector<8x32xf32>
    %cst_52 = arith.constant 1.000000e+00 : f32
    %267 = vector.broadcast %cst_52 : f32 to vector<8x32xf32>
    %268 = arith.addf %267, %266 : vector<8x32xf32>
    %269 = arith.divf %267, %268 : vector<8x32xf32>
    %270 = vector.extract_strided_slice %257 {offsets = [0, 64], sizes = [8, 32], strides = [1, 1]} : vector<8x96xf32> to vector<8x32xf32>
    %271 = arith.mulf %263, %203 : vector<8x32xf32>
    %272 = arith.addf %270, %271 : vector<8x32xf32>
    %273 = math.tanh %272 : vector<8x32xf32>
    %cst_53 = arith.constant 1.000000e+00 : f32
    %274 = vector.broadcast %cst_53 : f32 to vector<8x32xf32>
    %275 = arith.subf %274, %269 : vector<8x32xf32>
    %276 = arith.mulf %275, %273 : vector<8x32xf32>
    %277 = arith.mulf %269, %203 : vector<8x32xf32>
    %278 = arith.addf %276, %277 : vector<8x32xf32>
    %279 = vector.extract_strided_slice %232 {offsets = [0, 0], sizes = [8, 1], strides = [1, 1]} : vector<8x2xf32> to vector<8x1xf32>
    %280 = vector.extract_strided_slice %6 {offsets = [0, 0], sizes = [1, 2], strides = [1, 1]} : vector<2x2xf32> to vector<1x2xf32>
    %281 = vector.broadcast %279 : vector<8x1xf32> to vector<8x2xf32>
    %282 = vector.broadcast %280 : vector<1x2xf32> to vector<8x2xf32>
    %283 = arith.mulf %281, %282 : vector<8x2xf32>
    %284 = vector.extract_strided_slice %232 {offsets = [0, 1], sizes = [8, 1], strides = [1, 1]} : vector<8x2xf32> to vector<8x1xf32>
    %285 = vector.extract_strided_slice %6 {offsets = [1, 0], sizes = [1, 2], strides = [1, 1]} : vector<2x2xf32> to vector<1x2xf32>
    %286 = vector.broadcast %284 : vector<8x1xf32> to vector<8x2xf32>
    %287 = vector.broadcast %285 : vector<1x2xf32> to vector<8x2xf32>
    %288 = arith.mulf %286, %287 : vector<8x2xf32>
    %289 = arith.addf %283, %288 : vector<8x2xf32>
    %290 = vector.broadcast %242 : vector<8x1xf32> to vector<8x2xf32>
    %291 = arith.mulf %290, %289 : vector<8x2xf32>
    %292 = arith.addf %232, %291 : vector<8x2xf32>
    %293 = arith.truncf %278 : vector<8x32xf32> to vector<8x32xbf16>
    %cst_54 = arith.constant dense<0.000000e+00> : vector<8x4xf32>
    %294 = tpu.matmul %293, %5, %cst_54 {dimension_numbers = #tpu.dot_dimension_numbers<[1], [0], [0], [1], [0, 0, 1, 1], [], []>} : vector<8x32xbf16>, vector<32x4xbf16>, vector<8x4xf32> -> vector<8x4xf32>
    %295 = arith.addf %294, %9 : vector<8x4xf32>
    %296 = vector.extract_strided_slice %295 {offsets = [0, 0], sizes = [8, 2], strides = [1, 1]} : vector<8x4xf32> to vector<8x2xf32>
    %297 = arith.negf %296 : vector<8x2xf32>
    %298 = math.exp %297 : vector<8x2xf32>
    %cst_55 = arith.constant 1.000000e+00 : f32
    %299 = vector.broadcast %cst_55 : f32 to vector<8x2xf32>
    %300 = arith.addf %299, %298 : vector<8x2xf32>
    %301 = arith.divf %299, %300 : vector<8x2xf32>
    %302 = vector.extract_strided_slice %295 {offsets = [0, 2], sizes = [8, 2], strides = [1, 1]} : vector<8x4xf32> to vector<8x2xf32>
    %cst_56 = arith.constant 1.000000e+00 : f32
    %303 = vector.broadcast %cst_56 : f32 to vector<8x2xf32>
    %304 = arith.subf %303, %301 : vector<8x2xf32>
    %305 = arith.mulf %304, %292 : vector<8x2xf32>
    %306 = arith.mulf %301, %302 : vector<8x2xf32>
    %307 = arith.addf %305, %306 : vector<8x2xf32>
    %308 = tpu.concatenate %307, %278, %301, %10 in 1 : vector<8x2xf32>, vector<8x32xf32>, vector<8x2xf32>, vector<8x92xf32> -> vector<8x128xf32>
    %309 = arith.index_cast %c3_i32 : i32 to index
    %c0_57 = arith.constant 0 : index
    %c0_58 = arith.constant 0 : index
    %310 = vector.load %arg9[%309, %c0_57, %c0_58] : memref<4x8x128xf32, #tpu.memory_space<vmem>>, vector<1x8x128xf32>
    %311 = vector.shape_cast %310 : vector<1x8x128xf32> to vector<8x128xf32>
    %312 = vector.shape_cast %308 : vector<8x128xf32> to vector<1x8x128xf32>
    tpu.vector_store %arg9[%309, %c0_57, %c0_58], %312 {strides = array<i32>} : memref<4x8x128xf32, #tpu.memory_space<vmem>>, vector<1x8x128xf32>,
    %c4_i32 = arith.constant 4 : i32
    %c0_59 = arith.constant 0 : index
    %c0_60 = arith.constant 0 : index
    %313 = vector.load %arg10[%c0_59, %c0_60] : memref<8x2xf32, #tpu.memory_space<vmem>>, vector<8x2xf32>
    tpu.vector_store %arg10[%c0_59, %c0_60], %307 {strides = array<i32>} : memref<8x2xf32, #tpu.memory_space<vmem>>, vector<8x2xf32>,
    %c0_61 = arith.constant 0 : index
    %c0_62 = arith.constant 0 : index
    %314 = vector.load %arg11[%c0_61, %c0_62] : memref<8x32xf32, #tpu.memory_space<vmem>>, vector<8x32xf32>
    tpu.vector_store %arg11[%c0_61, %c0_62], %278 {strides = array<i32>} : memref<8x32xf32, #tpu.memory_space<vmem>>, vector<8x32xf32>,
    return
  }
  func.func @transform_0(%arg0: i32) -> (i32, i32, i32) {
    %c0_i32 = arith.constant 0 : i32
    %c0_i32_0 = arith.constant 0 : i32
    %c0_i32_1 = arith.constant 0 : i32
    return %arg0, %c0_i32, %c0_i32_0 : i32, i32, i32
  }
  func.func @transform_1(%arg0: i32) -> (i32, i32) {
    %c0_i32 = arith.constant 0 : i32
    %c0_i32_0 = arith.constant 0 : i32
    %c0_i32_1 = arith.constant 0 : i32
    return %c0_i32, %c0_i32_0 : i32, i32
  }
  func.func @transform_2(%arg0: i32) -> (i32, i32) {
    %c0_i32 = arith.constant 0 : i32
    %c0_i32_0 = arith.constant 0 : i32
    %c0_i32_1 = arith.constant 0 : i32
    return %c0_i32, %c0_i32_0 : i32, i32
  }
  func.func @transform_3(%arg0: i32) -> (i32, i32) {
    %c0_i32 = arith.constant 0 : i32
    %c0_i32_0 = arith.constant 0 : i32
    %c0_i32_1 = arith.constant 0 : i32
    return %c0_i32, %c0_i32_0 : i32, i32
  }
  func.func @transform_4(%arg0: i32) -> (i32, i32) {
    %c0_i32 = arith.constant 0 : i32
    %c0_i32_0 = arith.constant 0 : i32
    %c0_i32_1 = arith.constant 0 : i32
    return %c0_i32, %c0_i32_0 : i32, i32
  }
  func.func @transform_5(%arg0: i32) -> (i32, i32) {
    %c0_i32 = arith.constant 0 : i32
    %c0_i32_0 = arith.constant 0 : i32
    %c0_i32_1 = arith.constant 0 : i32
    return %c0_i32, %c0_i32_0 : i32, i32
  }
  func.func @transform_6(%arg0: i32) -> (i32, i32) {
    %c0_i32 = arith.constant 0 : i32
    %c0_i32_0 = arith.constant 0 : i32
    %c0_i32_1 = arith.constant 0 : i32
    return %c0_i32, %c0_i32_0 : i32, i32
  }
  func.func @transform_7(%arg0: i32) -> (i32, i32) {
    %c0_i32 = arith.constant 0 : i32
    %c0_i32_0 = arith.constant 0 : i32
    %c0_i32_1 = arith.constant 0 : i32
    return %c0_i32, %c0_i32_0 : i32, i32
  }
  func.func @transform_8(%arg0: i32) -> (i32, i32, i32) {
    %c0_i32 = arith.constant 0 : i32
    %c0_i32_0 = arith.constant 0 : i32
    %c0_i32_1 = arith.constant 0 : i32
    return %arg0, %c0_i32, %c0_i32_0 : i32, i32, i32
  }
}

</mosaic_0001>

<bundles_post_ra>
// kernel: tpu_custom_call.1
= control target key start
LH: loop header
LB: loop body
LE: loop exit
PB: predicated region body
PF: predicated region fallthrough
CT: control target
= control target key end

     0   :  { %13 = vsyncpa [#allocation5], 0  ;;  %s1964_s0 = inlined_call_operand.hbm [shape: f32[8,8,97], index: 0, kind: input, shape index: {}]   ;;  %s1965_s1 = inlined_call_operand.vmem [shape: f32[8,2], index: 1, kind: input, shape index: {}]   ;;  %s1966_s2 = inlined_call_operand.vmem [shape: f32[8,32], index: 2, kind: input, shape index: {}]   ;;  %s1967_s3 = inlined_call_operand.vmem [shape: f32[2,96], index: 3, kind: input, shape index: {}]   ;;  %s1968_s4 = inlined_call_operand.vmem [shape: bf16[32,96], index: 4, kind: input, shape index: {}]   ;;  %s1969_s5 = inlined_call_operand.vmem [shape: bf16[32,4], index: 5, kind: input, shape index: {}]   ;;  %s1970_s6 = inlined_call_operand.vmem [shape: f32[1,4], index: 6, kind: input, shape index: {}]   ;;  %s1971_s7 = inlined_call_operand.vmem [shape: f32[2,2], index: 7, kind: input, shape index: {}]   ;;  %s1972_s8 = inlined_call_operand.hbm [shape: f32[8,8,128], index: 8, kind: output, shape index: {}]  }
   0x1   :  { %15 = vsyncpa [#allocation5 + $0x1], 0 }
   0x2   :  { %16 = vsyncpa [#allocation6], 0 }
   0x3   :  { %18 = vsyncpa [#allocation6 + $0x1], 0  ;;  %s1554_s27 = smov 0   ;;  %s1556_s28 = smov 0  }
   0x4   :  { %s1558_s29 = smov 0   ;;  %s1560_s30 = smov 0  }
   0x5 LB: > { %s1575_s9 = sadd.s32 4294967295, %s1490_s30   ;;  %s1151_s10 = sadd.s32 4294967294, %s1490_s30   ;;  %s1490_s30 = sphi %s1560_s30, %s1989_s30   ;;  %s1486_s29 = sphi %s1558_s29, %s1988_s29   ;;  %s1482_s28 = sphi %s1556_s28, %s1987_s28   ;;  %s1478_s27 = sphi %s1554_s27, %s1986_s27  }
   0x6   : > { %s1579_s11 = sadd.s32 1, %s1490_s30   ;;  %s31_s12 = sadd.s32 1, %s1486_s29 }
   0x7   : > { %s28_s13 = ssub.s32 %s1490_s30, %s1579_s11  ;;  %p38_p0 = scmp.ne.s32.totalorder %s1486_s29, %s1482_s28 }
   0x8   : > { %p29_p1 = scmp.eq.s32.totalorder %s28_s13, 0  ;;  %p39_p2 = scmp.eq.s32.totalorder %s1490_s30, 0 }
   0x9   : > { %p44_p3 = scmp.ne.s32.totalorder %s1482_s28, %s1478_s27  ;;  %p45_p4 = scmp.eq.s32.totalorder %s1575_s9, 0 }
   0xa   : > { %s1591_s14 = scalar_select %p29_p1, %s1486_s29, %s31_s12  }
   0xb   : > { %p1593_p5 = por %p39_p2, %p38_p0  ;;  %p1597_p6 = por %p45_p4, %p44_p3 }
   0xc   : > { %1975 = sst [smem:[#allocation10_spill]] %s1591_s14  ;;  %p215_p7 = scmp.eq.s32.totalorder %s1575_s9, 1 }
   0xd   : > { %s1977_s16 = scalar_select %p1597_p6, 1, 0 }
   0xe   : > { %p221_p8 = scmp.eq.s32.totalorder %s1151_s10, 1  ;;  %p1295_p10 = scmp.lt.s32.totalorder %s1490_s30, 2 }
   0xf   : > { %p1604_p11 = por %p215_p7, %p38_p0  ;;  %s262_s19 = sand.u32 1, %s1486_s29  }
  0x10   : > { %p1608_p12 = por %p221_p8, %p44_p3  ;;  %s1193_s20 = sshll.u32 %s1490_s30, 9 }
  0x11   : > { %s1978_s17 = scalar_select %p1604_p11, 1, 0 }
  0x12   : > { %s1979_s18 = scalar_select %p1608_p12, 1, 0 }
  0x13   : > { %s1154_s21 = sshll.u32 %s262_s19, 5  ;;  %s1617_s24 = scalar_lea.hbm %s1964_s0, %s1193_s20 }
  0x14   : > { %s266_s25 = scalar_lea.vmem [#allocation4], %s1154_s21  ;;  %p1621_p13 = pnand %p1295_p10, %p1593_p5 }
  0x15   : > { %s273_s26 = sshll.u32 %s266_s25, 4  ;;  %s1627_s12 = scalar_lea.sflag [#allocation5], %s262_s19  ;;  %s1625_s26 = int_to_ptr.vmem [resolvable:$true] %s273_s26 }
  0x16   : > { %s1398_s13 = scalar_lea.hbm %s1617_s24, 512  ;;  %p1400_p1 = pneg %p1621_p13 }
  0x17   : > { %p1399_p0 = scmp.ne.s32.totalorder %s1617_s24, %s1398_s13  ;;  %s1403_s21 = scalar_lea.hbm %s1964_s0, 1024 }
  0x18   : > { %p1404_p4 = scmp.lt.s32.totalorder %s1617_s24, %s1964_s0  ;;  %p1405_p5 = scmp.lt.s32.totalorder %s1403_s21, %s1398_s13 }
  0x19   : > { %p1401_p2 = pnand %p1400_p1, %p1399_p0 }
  0x1a   : > { %p1406_p7 = por %p1405_p5, %p1404_p4 }
  0x1b   : > { %p1402_p3 = pneg %p1401_p2 }
  0x1d   : > { %p1407_p8 = pnand %p1406_p7, %p1402_p3 }
  0x1f   : > { %1410 = shalt.err (!%p1407_p8)
}
  0x20   : > { %s1411_s19 = scalar_lea.vmem %s1625_s26, 512  ;;  %s1492_s25 = smov [#allocation4]  }
  0x21   : > { %p1412_p10 = scmp.ne.s32.totalorder %s1625_s26, %s1411_s19  ;;  %s1416_s14 = sshll.u32 %s1492_s25, 4  ;;  %s1417_s14 = int_to_ptr.vmem [resolvable:$false] %s1416_s14 }
  0x22   : > { %s1418_s20 = scalar_lea.vmem %s1417_s14, 1024  ;;  %p1419_p2 = scmp.lt.s32.totalorder %s1625_s26, %s1417_s14 }
  0x23   : > { %p1414_p9 = pnand %p1412_p10, %p1400_p1  ;;  %p1420_p12 = scmp.lt.s32.totalorder %s1418_s20, %s1411_s19 }
  0x25   : > { %p1415_p0 = pneg %p1414_p9  ;;  %p1421_p11 = por %p1420_p12, %p1419_p2 }
  0x27   : > { %p1422_p6 = pnand %p1421_p11, %p1415_p0 }
  0x29   : > { %1425 = shalt.err (!%p1422_p6)
}
  0x2a   : > { %s1493_s13 = smov 128   ;;  %s1494_s22 = smov 8  }
  0x2b   : > { %1290 = dma.hbm_to_vmem [thread:$0]  (!%p1621_p13), %s1617_s24, 512, %s1625_s26, %s1627_s12, %s1493_s13, %s1493_s13, %s1494_s22  }
  0x2c   : > { %p1157_p9 = scmp.ge.s32.totalorder %s1490_s30, 1  ;;  %p281_p1 = scmp.lt.s32.totalorder %s1490_s30, 3 }
  0x2e   : > { %p282_p3 = pnand %p1157_p9, %p281_p1 }
  0x2f   : > { %s1651_s14 = sand.u32 (!%p282_p3), 1, %s1482_s28   ;;  %p1981_p6 = scmp.ne.s32.totalorder (!%p282_p3), %s1977_s16, 0 }
  0x30   : > { %285 = sbr.rel (%p282_p3) target bundleno = 3572 (0xdf4), region = 52  ;;  %s1158_s21 = sshll.u32 (!%p282_p3), %s1651_s14, 5 }
  0x31   : > { %s288_s15 = scalar_lea.sflag (!%p282_p3), [#allocation5], %s1651_s14  ;;  %s1655_s23 = scalar_lea.vmem (!%p282_p3), [#allocation4], %s1158_s21 }
  0x35   : > { %1469 = dma.done.wait (%p1981_p6), %s288_s15, 512  }
  0x36   : > { %1471 = vsyncadd (%p1981_p6), %s288_s15, 4294966784  ;;  %s1661_s24 = scalar_lea.vmem [#allocation7], %s1158_s21  ;;  %p1160_p11 = scmp.ne.s32.totalorder %s1575_s9, 0 }
  0x38   : > { %330 = sbr.rel (%p1160_p11) target bundleno = 64 (0x40), region = 60 }
  0x3d   : > { %v331_v0 = vld [vmem:[%s1965_s1] sm:$0xff]  ;;  %vm332_vm0 = vcmask 15360   ;;  %vm335_vm1 = vcmask 261120  }
  0x3e   : > { %v334_v1 = vld [vmem:[%s1966_s2] sm:$0xff]  ;;  %333 = vst.msk [vmem:[#allocation2] sm:$0xff] %vm332_vm0, %v331_v0 }
  0x3f   : > { %336 = vst.msk [vmem:[#allocation3] sm:$0xff] %vm335_vm1, %v334_v1 }
  0x40 PF: > { %v1673_v2 = vld [vmem:[%s1968_s4 + $0x8] sm:$0xff]   ;;  %v1495_v3 = vmov 0.0   ;;  %v1681_v4 = vld [vmem:[%s1968_s4] sm:$0xff]   ;;  %vm1496_vm2 = vmmov 0   ;;  %v1497_v7 = vmov 0   ;;  %vm390_vm3 = vcmask 261120  }
  0x41   : > { %1219 = vmatprep.subr.bf16.mxu0 %v1495_v3  ;;  %1227 = vmatprep.subr.bf16.mxu1 %v1495_v3  ;;  %v1498_v9 = vmov 1   ;;  %v362_v10 = vlaneseq  ;;  %v337_v15 = vld [vmem:[%s1967_s3] sm:$0x3]  ;;  %v356_v22 = vld [vmem:[%s1655_s23] sm:$0xff]  ;;  %s1499_s15 = smov 64   ;;  %v1500_v34 = vmov 96  }
  0x42   : > { %1220 = vmatpush3.bf16.msra.mxu0 %v1673_v2  ;;  %1223 = vmatprep.mubr.msk.bf16.mxu0 %vm1496_vm2, %v1495_v3  ;;  %s1501_s26 = smov 96   ;;  %s1502_s10 = smov 32   ;;  %v1732_v38 = vld [vmem:[%s1969_s5 + $0x8] sm:$0xff]   ;;  %v1738_v39 = vld [vmem:[%s1969_s5] sm:$0xff]   ;;  %vm560_vm4 = vcmask 15360   ;;  %vm562_vm5 = vcmask 277504  }
  0x43   : > { %1221 = vmatprep.subr.bf16.mxu0 %v1495_v3  ;;  %1344 = vset.pattern.permute.xlu0 %v1497_v7  ;;  %v1702_v11 = vshrl.u32 %v362_v10, 7  ;;  %v1766_v48 = vld [vmem:[%s1970_s6] ss:$0 sm:$0xff]  ;;  %s1503_s22 = smov 126   ;;  %s1505_s12 = smov 34   ;;  %vm564_vm6 = vcmask 293888  }
  0x44   : > { %1231 = vmatprep.mubr.msk.bf16.mxu1 %vm1496_vm2, %v1495_v3  ;;  %1346 = vset.pattern.permute.xlu1 %v1500_v34  ;;  %v346_v61 = vld [vmem:[%s1971_s7] sm:$0x3]  ;;  %p1982_p13 = scmp.ne.s32.totalorder %s1978_s17, 0  ;;  %s1506_s13 = smov [#allocation7]  }
  0x45   : > { %v1685_v6 = vld [vmem:[#allocation2] sm:$0xff]  ;;  %v364_v13 = vsub.s32 0, %v1702_v11  ;;  %v373_v14 = vsub.s32 1, %v1702_v11  ;;  %1228 = vmatpush3.bf16.msra.mxu1 %v1732_v38 }
  0x46   : > { %v355_v5 = vld [vmem:[#allocation3] sm:$0xff]  ;;  %359 = vperm.xlu0 %1344, %v1685_v6   ;;  %1222 = vmatpush3.bf16.msra.mxu0 %v1681_v4 }
  0x47   : > { %v377_v8 = vpack.c.bf16 %v355_v5, %v355_v5  ;;  %1235 = vmatprep.subr.bf16.mxu0 %v1495_v3  ;;  %v1713_v16 = vrot.slane %v337_v15, %v364_v13  ;;  %v1717_v17 = vrot.slane %v337_v15, %v373_v14  ;;  %1229 = vmatprep.subr.bf16.mxu1 %v1495_v3 }
  0x48   : > { %v1775_v62 = vrot.slane %v346_v61, %v364_v13  ;;  %v1779_v63 = vrot.slane %v346_v61, %v373_v14 }
  0x49   : > { %1224 = vmatmul.mubr.msk.bf16.vlgmr.msra.gmra.mxu0 %vm390_vm3, %v377_v8  ;;  %1230 = vmatpush3.bf16.msra.mxu1 %v1738_v39 }
  0x4a   : > { %1345 = vset.pattern.permute.xlu0 %v1498_v9  ;;  %1236 = vmatpush3.bf16.msra.mxu0 %v1673_v2 }
  0x4b   : > { %368 = vperm.xlu0 %1345, %v1685_v6   ;;  %1239 = vmatprep.mubr.msk.bf16.mxu0 %vm1496_vm2, %v1495_v3 }
  0x4c   : > { %1237 = vmatprep.subr.bf16.mxu0 %v1495_v3  ;;  %1243 = vmatprep.subr.bf16.mxu1 %v1495_v3 }
  0x4e   : > { %1238 = vmatpush3.bf16.msra.mxu0 %v1681_v4 }
  0x4f   : > { %1251 = vmatprep.subr.bf16.mxu0 %v1495_v3 }
  0xc1   : > { %v1704_v12 = vpop.permute.xlu0 %359 }
  0xc2   : > { %v366_v19 = vmul.f32 %v1713_v16, %v1704_v12  ;;  %v465_v0 = vmul.f32 %v1775_v62, %v1704_v12 }
  0xc6   : > { %v1719_v18 = vpop.permute.xlu0 %368 }
  0xc7   : > { %v375_v20 = vmul.f32 %v1717_v17, %v1719_v18  ;;  %v470_v1 = vmul.f32 %v1779_v63, %v1719_v18 }
  0xc9   : > { %v376_v21 = vadd.f32 %v375_v20, %v366_v19  ;;  %v471_v8 = vadd.f32 %v470_v1, %v465_v0 }
  0xcb   : > { %v434_v23 = vadd.f32 %v376_v21, %v356_v22 }
 0x109   : > { %v428_v24 = vpop.f32.mrf.mxu0 }
 0x10a   : > { %v435_v25 = vadd.f32 %v434_v23, %v428_v24 }
 0x10b   : > { %v1225_v26 = vpop.f32.mrf.mxu0 }
 0x10c   : > { %v1165_v27 = vmul.f32 -1.442695, %v435_v25 }
 0x10d   : > { %v431_v28 = vpop.f32.mrf.mxu0 }
 0x10e   : > { %1358 = vpow2.f32 %v1165_v27 }
 0x10f   : > { %v1226_v29 = vpop.f32.mrf.mxu0 }
 0x11b   : > { %v1359_v30 = vpop.eup %1358 }
 0x11c   : > { %v439_v31 = vadd.f32 1.0, %v1359_v30 }
 0x11e   : > { %1360 = vrcp.f32 %v439_v31 }
 0x12b   : > { %v1361_v32 = vpop.eup %1360 }
 0x12c   : > { %v442_v33 = vmul.f32 %v1361_v32, %v355_v5  ;;  %v449_v41 = vsub.f32 1.0, %v1361_v32 }
 0x12e   : > { %444 = vrot.lane.b32.xlu1 %v442_v33, %s1499_s15 }
 0x1a0   : > { %v445_v35 = vpop.permute.xlu1 %444 }
 0x1a1   : > { %v447_v36 = vadd.f32 %v445_v35, %v435_v25 }
 0x1a3   : > { %1362 = vtanh.f32 %v447_v36 }
 0x1b0   : > { %v1363_v37 = vpop.eup %1362 }
 0x1b1   : > { %451 = vrot.lane.b32.xlu1 %v1363_v37, %s1501_s26 }
 0x1b5   : > { %456 = vrot.lane.b32.xlu1 %v355_v5, %s1502_s10 }
 0x1b9   : > { %474 = vperm.xlu1 %1346, %v356_v22   ;;  %v1170_v22 = vld [vmem:[%s1655_s23 + $0x8] sm:$0xff] }
 0x1bd   : > { %1347 = vset.pattern.permute.xlu1 %v1497_v7 }
 0x223   : > { %v452_v40 = vpop.permute.xlu1 %451 }
 0x224   : > { %v454_v43 = vmul.f32 %v452_v40, %v449_v41 }
 0x227   : > { %v457_v42 = vpop.permute.xlu1 %456 }
 0x228   : > { %v459_v44 = vmul.f32 %v1361_v32, %v457_v42 }
 0x22a   : > { %v1744_v45 = vadd.f32 %v459_v44, %v454_v43 }
 0x22c   : > { %v479_v46 = vpack.c.bf16 %v1744_v45, %v1744_v45 }
 0x22e   : > { %481 = vrot.lane.b32.xlu0 %v479_v46, %s1501_s26 }
 0x234   : > { %v475_v5 = vpop.permute.xlu1 %474 }
 0x235   : > { %v477_v10 = vmul.f32 %v475_v5, %v471_v8 }
 0x237   : > { %v478_v13 = vadd.f32 %v477_v10, %v1685_v6 }
 0x2a0   : > { %v482_v47 = vpop.permute.xlu0 %481 }
 0x2a1   : > { %1232 = vmatmul.mubr.msk.bf16.vlgmr.msra.gmra.mxu1 %vm390_vm3, %v482_v47  ;;  %1240 = vmatmul.mubr.msk.bf16.vlgmr.msra.gmra.mxu0 %vm390_vm3, %v482_v47 }
 0x2a2   : > { %1244 = vmatpush3.bf16.msra.mxu1 %v1732_v38  ;;  %1252 = vmatpush3.bf16.msra.mxu0 %v1673_v2 }
 0x2a3   : > { %1245 = vmatprep.subr.bf16.mxu1 %v1495_v3  ;;  %1253 = vmatprep.subr.bf16.mxu0 %v1495_v3 }
 0x2a4   : > { %1247 = vmatprep.mubr.msk.bf16.mxu1 %vm1496_vm2, %v1495_v3  ;;  %1255 = vmatprep.mubr.msk.bf16.mxu0 %vm1496_vm2, %v1495_v3 }
 0x2a6   : > { %1246 = vmatpush3.bf16.msra.mxu1 %v1738_v39  ;;  %1254 = vmatpush3.bf16.msra.mxu0 %v1681_v4 }
 0x2a7   : > { %1259 = vmatprep.subr.bf16.mxu1 %v1495_v3  ;;  %1267 = vmatprep.subr.bf16.mxu0 %v1495_v3 }
 0x361   : > { %v532_v49 = vpop.f32.mrf.mxu1  ;;  %v615_v50 = vpop.f32.mrf.mxu0 }
 0x362   : > { %v533_v51 = vadd.f32 %v1766_v48, %v532_v49 }
 0x363   : > { %v1233_v52 = vpop.f32.mrf.mxu1  ;;  %v1241_v53 = vpop.f32.mrf.mxu0 }
 0x364   : > { %547 = vrot.lane.b32.xlu0 %v533_v51, %s1503_s22  ;;  %v1169_v58 = vmul.f32 -1.442695, %v533_v51 }
 0x365   : > { %v535_v54 = vpop.f32.mrf.mxu1  ;;  %v618_v55 = vpop.f32.mrf.mxu0 }
 0x366   : > { %1364 = vpow2.f32 %v1169_v58 }
 0x367   : > { %v1234_v56 = vpop.f32.mrf.mxu1  ;;  %v1242_v57 = vpop.f32.mrf.mxu0 }
 0x373   : > { %v1365_v59 = vpop.eup %1364 }
 0x374   : > { %v541_v60 = vadd.f32 1.0, %v1365_v59 }
 0x376   : > { %1366 = vrcp.f32 %v541_v60 }
 0x383   : > { %v1785_v9 = vpop.eup %1366 }
 0x384   : > { %v544_v15 = vsub.f32 1.0, %v1785_v9 }
 0x386   : > { %v545_v11 = vmul.f32 %v544_v15, %v478_v13 }
 0x3d6   : > { %v548_v19 = vpop.permute.xlu0 %547 }
 0x3d7   : > { %v550_v14 = vmul.f32 %v1785_v9, %v548_v19 }
 0x3d9   : > { %v1790_v20 = vadd.f32 %v550_v14, %v545_v11 }
 0x3db   : > { %576 = vperm.xlu0 %1345, %v1790_v20   ;;  %571 = vperm.xlu1 %1347, %v1790_v20  }
 0x3df   : > { %629 = vrot.lane.b32.xlu1 %v1744_v45, %s1501_s26 }
 0x3e0   : > { %1348 = vset.pattern.permute.xlu1 %v1500_v34 }
 0x456   : > { %v577_v12 = vpop.permute.xlu0 %576  ;;  %v572_v18 = vpop.permute.xlu1 %571 }
 0x457   : > { %v579_v21 = vmul.f32 %v577_v12, %v1717_v17  ;;  %v574_v6 = vmul.f32 %v572_v18, %v1713_v16  ;;  %v647_v58 = vmul.f32 %v572_v18, %v1775_v62  ;;  %v1176_v18 = vld [vmem:[%s1655_s23 + $0x10] sm:$0xff] }
 0x459   : > { %v580_v23 = vadd.f32 %v579_v21, %v574_v6 }
 0x45a   : > { %v630_v30 = vpop.permute.xlu1 %629 }
 0x45b   : > { %v621_v24 = vadd.f32 %v1170_v22, %v580_v23 }
 0x45d   : > { %v622_v25 = vadd.f32 %v621_v24, %v615_v50 }
 0x45f   : > { %v1172_v26 = vmul.f32 -1.442695, %v622_v25 }
 0x461   : > { %1368 = vpow2.f32 %v1172_v26 }
 0x46e   : > { %v1369_v27 = vpop.eup %1368 }
 0x46f   : > { %v626_v28 = vadd.f32 1.0, %v1369_v27 }
 0x471   : > { %1370 = vrcp.f32 %v626_v28 }
 0x47e   : > { %v1371_v29 = vpop.eup %1370 }
 0x47f   : > { %v632_v31 = vmul.f32 %v1371_v29, %v630_v30  ;;  %v639_v36 = vsub.f32 1.0, %v1371_v29  ;;  %v645_v40 = vmul.f32 %v1371_v29, %v1744_v45 }
 0x481   : > { %634 = vrot.lane.b32.xlu0 %v632_v31, %s1499_s15 }
 0x4f3   : > { %v635_v32 = vpop.permute.xlu0 %634 }
 0x4f4   : > { %v637_v33 = vadd.f32 %v635_v32, %v622_v25 }
 0x4f6   : > { %1372 = vtanh.f32 %v637_v33 }
 0x503   : > { %v1373_v35 = vpop.eup %1372 }
 0x504   : > { %641 = vrot.lane.b32.xlu1 %v1373_v35, %s1501_s26 }
 0x508   : > { %652 = vperm.xlu1 %1348, %v1170_v22  }
 0x50c   : > { %1349 = vset.pattern.permute.xlu1 %v1497_v7 }
 0x576   : > { %v642_v37 = vpop.permute.xlu1 %641 }
 0x577   : > { %v644_v41 = vmul.f32 %v642_v37, %v639_v36 }
 0x579   : > { %v1804_v42 = vadd.f32 %v645_v40, %v644_v41 }
 0x57b   : > { %v657_v43 = vpack.c.bf16 %v1804_v42, %v1804_v42 }
 0x57d   : > { %659 = vrot.lane.b32.xlu0 %v657_v43, %s1501_s26 }
 0x583   : > { %v653_v59 = vpop.permute.xlu1 %652 }
 0x5ef   : > { %v660_v44 = vpop.permute.xlu0 %659 }
 0x5f0   : > { %1248 = vmatmul.mubr.msk.bf16.vlgmr.msra.gmra.mxu1 %vm390_vm3, %v660_v44  ;;  %1256 = vmatmul.mubr.msk.bf16.vlgmr.msra.gmra.mxu0 %vm390_vm3, %v660_v44 }
 0x5f1   : > { %1260 = vmatpush3.bf16.msra.mxu1 %v1732_v38  ;;  %1268 = vmatpush3.bf16.msra.mxu0 %v1673_v2 }
 0x5f2   : > { %1261 = vmatprep.subr.bf16.mxu1 %v1495_v3  ;;  %1269 = vmatprep.subr.bf16.mxu0 %v1495_v3 }
 0x5f3   : > { %1263 = vmatprep.mubr.msk.bf16.mxu1 %vm1496_vm2, %v1495_v3  ;;  %1271 = vmatprep.mubr.msk.bf16.mxu0 %vm1496_vm2, %v1495_v3 }
 0x5f5   : > { %1262 = vmatpush3.bf16.msra.mxu1 %v1738_v39  ;;  %1270 = vmatpush3.bf16.msra.mxu0 %v1681_v4  ;;  %v648_v4 = vmul.f32 %v577_v12, %v1779_v63 }
 0x5f6   : > { %1275 = vmatprep.subr.bf16.mxu1 %v1495_v3 }
 0x5f7   : > { %v649_v60 = vadd.f32 %v648_v4, %v647_v58 }
 0x5f9   : > { %v655_v0 = vmul.f32 %v653_v59, %v649_v60 }
 0x5fb   : > { %v656_v5 = vadd.f32 %v655_v0, %v1790_v20 }
 0x6b0   : > { %v698_v46 = vpop.f32.mrf.mxu1  ;;  %v779_v47 = vpop.f32.mrf.mxu0 }
 0x6b1   : > { %v699_v2 = vadd.f32 %v1766_v48, %v698_v46 }
 0x6b2   : > { %v1249_v49 = vpop.f32.mrf.mxu1  ;;  %v1257_v50 = vpop.f32.mrf.mxu0 }
 0x6b3   : > { %713 = vrot.lane.b32.xlu0 %v699_v2, %s1503_s22  ;;  %v1174_v55 = vmul.f32 -1.442695, %v699_v2 }
 0x6b4   : > { %v701_v51 = vpop.f32.mrf.mxu1  ;;  %v782_v52 = vpop.f32.mrf.mxu0 }
 0x6b5   : > { %1374 = vpow2.f32 %v1174_v55 }
 0x6b6   : > { %v1250_v53 = vpop.f32.mrf.mxu1  ;;  %v1258_v54 = vpop.f32.mrf.mxu0 }
 0x6c2   : > { %v1375_v56 = vpop.eup %1374 }
 0x6c3   : > { %v707_v57 = vadd.f32 1.0, %v1375_v56 }
 0x6c5   : > { %1376 = vrcp.f32 %v707_v57 }
 0x6d2   : > { %v1826_v61 = vpop.eup %1376 }
 0x6d3   : > { %v710_v1 = vsub.f32 1.0, %v1826_v61 }
 0x6d5   : > { %v711_v10 = vmul.f32 %v710_v1, %v656_v5 }
 0x725   : > { %v714_v8 = vpop.permute.xlu0 %713 }
 0x726   : > { %v716_v15 = vmul.f32 %v1826_v61, %v714_v8 }
 0x728   : > { %v1831_v13 = vadd.f32 %v716_v15, %v711_v10 }
 0x72a   : > { %740 = vperm.xlu0 %1345, %v1831_v13   ;;  %735 = vperm.xlu1 %1349, %v1831_v13  }
 0x72e   : > { %793 = vrot.lane.b32.xlu1 %v1804_v42, %s1501_s26 }
 0x72f   : > { %1350 = vset.pattern.permute.xlu1 %v1500_v34 }
 0x7a5   : > { %v741_v19 = vpop.permute.xlu0 %740  ;;  %v736_v11 = vpop.permute.xlu1 %735 }
 0x7a6   : > { %v743_v14 = vmul.f32 %v741_v19, %v1717_v17  ;;  %v738_v12 = vmul.f32 %v736_v11, %v1713_v16 }
 0x7a8   : > { %v744_v21 = vadd.f32 %v743_v14, %v738_v12 }
 0x7a9   : > { %v794_v27 = vpop.permute.xlu1 %793 }
 0x7aa   : > { %v785_v6 = vadd.f32 %v1176_v18, %v744_v21 }
 0x7ac   : > { %v786_v22 = vadd.f32 %v785_v6, %v779_v47 }
 0x7ae   : > { %v1178_v23 = vmul.f32 -1.442695, %v786_v22 }
 0x7b0   : > { %1378 = vpow2.f32 %v1178_v23 }
 0x7bd   : > { %v1379_v24 = vpop.eup %1378 }
 0x7be   : > { %v790_v25 = vadd.f32 1.0, %v1379_v24 }
 0x7c0   : > { %1380 = vrcp.f32 %v790_v25 }
 0x7cd   : > { %v1381_v26 = vpop.eup %1380 }
 0x7ce   : > { %v796_v28 = vmul.f32 %v1381_v26, %v794_v27  ;;  %v803_v32 = vsub.f32 1.0, %v1381_v26  ;;  %v809_v35 = vmul.f32 %v1381_v26, %v1804_v42 }
 0x7d0   : > { %798 = vrot.lane.b32.xlu0 %v796_v28, %s1499_s15 }
 0x842   : > { %v799_v29 = vpop.permute.xlu0 %798 }
 0x843   : > { %v801_v30 = vadd.f32 %v799_v29, %v786_v22 }
 0x845   : > { %1382 = vtanh.f32 %v801_v30 }
 0x852   : > { %v1383_v31 = vpop.eup %1382 }
 0x853   : > { %805 = vrot.lane.b32.xlu1 %v1383_v31, %s1501_s26 }
 0x857   : > { %816 = vperm.xlu1 %1350, %v1176_v18  }
 0x85b   : > { %1351 = vset.pattern.permute.xlu1 %v1497_v7 }
 0x8c5   : > { %v806_v33 = vpop.permute.xlu1 %805 }
 0x8c6   : > { %v808_v36 = vmul.f32 %v806_v33, %v803_v32 }
 0x8c8   : > { %v1845_v37 = vadd.f32 %v809_v35, %v808_v36 }
 0x8ca   : > { %v821_v40 = vpack.c.bf16 %v1845_v37, %v1845_v37 }
 0x8cc   : > { %823 = vrot.lane.b32.xlu0 %v821_v40, %s1501_s26 }
 0x8d2   : > { %v817_v54 = vpop.permute.xlu1 %816 }
 0x93e   : > { %v824_v41 = vpop.permute.xlu0 %823 }
 0x93f   : > { %1264 = vmatmul.mubr.msk.bf16.vlgmr.msra.gmra.mxu1 %vm390_vm3, %v824_v41  ;;  %1272 = vmatmul.mubr.msk.bf16.vlgmr.msra.gmra.mxu0 %vm390_vm3, %v824_v41 }
 0x940   : > { %1276 = vmatpush3.bf16.msra.mxu1 %v1732_v38  ;;  %1279 = vmatprep.mubr.msk.bf16.mxu1 %vm1496_vm2, %v1495_v3 }
 0x941   : > { %1277 = vmatprep.subr.bf16.mxu1 %v1495_v3  ;;  %v812_v3 = vmul.f32 %v741_v19, %v1779_v63  ;;  %v1182_v19 = vld [vmem:[%s1655_s23 + $0x18] sm:$0xff]  ;;  %s1504_s23 = smov 98  }
 0x944   : > { %1278 = vmatpush3.bf16.msra.mxu1 %v1738_v39  ;;  %v811_v39 = vmul.f32 %v736_v11, %v1775_v62 }
 0x946   : > { %v813_v55 = vadd.f32 %v812_v3, %v811_v39 }
 0x948   : > { %v819_v57 = vmul.f32 %v817_v54, %v813_v55 }
 0x94a   : > { %v820_v58 = vadd.f32 %v819_v57, %v1831_v13 }
 0x9ff   : > { %v862_v7 = vpop.f32.mrf.mxu1  ;;  %v943_v43 = vpop.f32.mrf.mxu0 }
 0xa00   : > { %v863_v44 = vadd.f32 %v1766_v48, %v862_v7 }
 0xa01   : > { %v1265_v46 = vpop.f32.mrf.mxu1  ;;  %v1273_v47 = vpop.f32.mrf.mxu0 }
 0xa02   : > { %877 = vrot.lane.b32.xlu0 %v863_v44, %s1503_s22  ;;  %v1180_v38 = vmul.f32 -1.442695, %v863_v44 }
 0xa03   : > { %v865_v2 = vpop.f32.mrf.mxu1  ;;  %v946_v49 = vpop.f32.mrf.mxu0 }
 0xa04   : > { %1384 = vpow2.f32 %v1180_v38 }
 0xa05   : > { %v1266_v50 = vpop.f32.mrf.mxu1  ;;  %v1274_v51 = vpop.f32.mrf.mxu0 }
 0xa11   : > { %v1385_v52 = vpop.eup %1384 }
 0xa12   : > { %v871_v53 = vadd.f32 1.0, %v1385_v52 }
 0xa14   : > { %1386 = vrcp.f32 %v871_v53 }
 0xa21   : > { %v1387_v56 = vpop.eup %1386 }
 0xa22   : > { %v874_v4 = vsub.f32 1.0, %v1387_v56 }
 0xa24   : > { %v875_v60 = vmul.f32 %v874_v4, %v820_v58 }
 0xa74   : > { %v878_v59 = vpop.permute.xlu0 %877 }
 0xa75   : > { %v880_v0 = vmul.f32 %v1387_v56, %v878_v59 }
 0xa77   : > { %v1862_v1 = vadd.f32 %v880_v0, %v875_v60 }
 0xa79   : > { %904 = vperm.xlu0 %1345, %v1862_v1   ;;  %899 = vperm.xlu1 %1351, %v1862_v1  }
 0xa7d   : > { %957 = vrot.lane.b32.xlu1 %v1845_v37, %s1501_s26  ;;  %1353 = vset.pattern.permute.xlu0 %v1500_v34 }
 0xa7e   : > { %1352 = vset.pattern.permute.xlu1 %v1500_v34 }
 0xaf4   : > { %v905_v5 = vpop.permute.xlu0 %904  ;;  %v900_v8 = vpop.permute.xlu1 %899 }
 0xaf5   : > { %v907_v10 = vmul.f32 %v905_v5, %v1717_v17  ;;  %v902_v15 = vmul.f32 %v900_v8, %v1713_v16  ;;  %v975_v31 = vmul.f32 %v900_v8, %v1775_v62 }
 0xaf7   : > { %v908_v11 = vadd.f32 %v907_v10, %v902_v15 }
 0xaf8   : > { %v958_v23 = vpop.permute.xlu1 %957 }
 0xaf9   : > { %v949_v14 = vadd.f32 %v1182_v19, %v908_v11 }
 0xafb   : > { %v950_v12 = vadd.f32 %v949_v14, %v943_v43 }
 0xafd   : > { %v1184_v18 = vmul.f32 -1.442695, %v950_v12 }
 0xaff   : > { %1388 = vpow2.f32 %v1184_v18 }
 0xb0c   : > { %v1389_v21 = vpop.eup %1388 }
 0xb0d   : > { %v954_v6 = vadd.f32 1.0, %v1389_v21 }
 0xb0f   : > { %1390 = vrcp.f32 %v954_v6 }
 0xb1c   : > { %v1391_v22 = vpop.eup %1390 }
 0xb1d   : > { %v960_v24 = vmul.f32 %v1391_v22, %v958_v23  ;;  %v967_v16 = vsub.f32 1.0, %v1391_v22  ;;  %v973_v27 = vmul.f32 %v1391_v22, %v1845_v37 }
 0xb1f   : > { %962 = vrot.lane.b32.xlu0 %v960_v24, %s1499_s15  ;;  %s1194_s15 = sshll.u32 %s1575_s9, 9  ;;  %s1065_s9 = scalar_lea.sflag [#allocation6], %s1651_s14 }
 0xb20   : > { %s1916_s25 = scalar_lea.hbm %s1972_s8, %s1194_s15 }
 0xb91   : > { %v963_v34 = vpop.permute.xlu0 %962 }
 0xb92   : > { %v965_v25 = vadd.f32 %v963_v34, %v950_v12 }
 0xb94   : > { %1392 = vtanh.f32 %v965_v25 }
 0xba1   : > { %v1393_v17 = vpop.eup %1392 }
 0xba2   : > { %969 = vrot.lane.b32.xlu1 %v1393_v17, %s1501_s26 }
 0xba6   : > { %980 = vperm.xlu1 %1352, %v1182_v19  }
 0xbaa   : > { %553 = vrot.lane.b32.xlu1 %v1744_v45, %s1504_s23  ;;  %v976_v45 = vmul.f32 %v905_v5, %v1779_v63 }
 0xbae   : > { %883 = vrot.lane.b32.xlu1 %v1845_v37, %s1504_s23 }
 0xbb2   : > { %557 = vrot.lane.b32.xlu1 %v1785_v9, %s1505_s12  ;;  %v977_v9 = vadd.f32 %v976_v45, %v975_v31 }
 0xbb6   : > { %887 = vrot.lane.b32.xlu1 %v1387_v56, %s1505_s12 }
 0xc14   : > { %v970_v26 = vpop.permute.xlu1 %969 }
 0xc15   : > { %v972_v28 = vmul.f32 %v970_v26, %v967_v16 }
 0xc17   : > { %v974_v29 = vadd.f32 %v973_v27, %v972_v28 }
 0xc19   : > { %1060 = vrot.lane.b32.xlu1 %v974_v29, %s1501_s26  ;;  %v985_v30 = vpack.c.bf16 %v974_v29, %v974_v29 }
 0xc1b   : > { %987 = vrot.lane.b32.xlu0 %v985_v30, %s1501_s26  ;;  %s1078_s26 = sshll.u32 %s1661_s24, 4  ;;  %s1918_s26 = int_to_ptr.vmem [resolvable:$true] %s1078_s26 }
 0xc1c   : > { %s1426_s20 = scalar_lea.vmem %s1918_s26, 512 }
 0xc1d   : > { %p1427_p12 = scmp.ne.s32.totalorder %s1918_s26, %s1426_s20 }
 0xc1f   : > { %719 = vrot.lane.b32.xlu0 %v1804_v42, %s1504_s23  ;;  %p1428_p4 = pnand %p1427_p12, %p1982_p13 }
 0xc21   : > { %v981_v32 = vpop.permute.xlu1 %980  ;;  %p1429_p5 = pneg %p1428_p4 }
 0xc22   : > { %v983_v33 = vmul.f32 %v981_v32, %v977_v9 }
 0xc23   : > { %1047 = vrot.lane.b32.xlu0 %v974_v29, %s1504_s23 }
 0xc24   : > { %v984_v54 = vadd.f32 %v983_v33, %v1862_v1 }
 0xc25   : > { %v554_v35 = vpop.permute.xlu1 %553 }
 0xc26   : > { %v561_v37 = vsel %vm560_vm4, %v1790_v20, %v554_v35 }
 0xc29   : > { %v884_v36 = vpop.permute.xlu1 %883 }
 0xc2a   : > { %v890_v42 = vsel %vm560_vm4, %v1862_v1, %v884_v36 }
 0xc2d   : > { %v558_v40 = vpop.permute.xlu1 %557 }
 0xc2e   : > { %v563_v63 = vsel %vm562_vm5, %v561_v37, %v558_v40 }
 0xc2f   : > { %v565_v62 = vsel %vm564_vm6, %v563_v63, 0.0 }
 0xc30   : > { %566 = vst [vmem:[%s1661_s24] sm:$0xff] %v565_v62 }
 0xc31   : > { %v888_v41 = vpop.permute.xlu1 %887 }
 0xc32   : > { %v891_v7 = vsel %vm562_vm5, %v890_v42, %v888_v41 }
 0xc33   : > { %v892_v43 = vsel %vm564_vm6, %v891_v7, 0.0 }
 0xc34   : > { %1181 = vst [vmem:[%s1661_s24 + $0x10] sm:$0xff] %v892_v43 }
 0xc8b   : > { %v1061_v44 = vpop.permute.xlu1 %1060 }
 0xc8c   : > { %1063 = vst.msk [vmem:[#allocation3] sm:$0xff] %vm390_vm3, %v1061_v44 }
 0xc8d   : > { %v988_v46 = vpop.permute.xlu0 %987 }
 0xc8e   : > { %1280 = vmatmul.mubr.msk.bf16.vlgmr.msra.gmra.mxu1 %vm390_vm3, %v988_v46 }
 0xd4e   : > { %v1026_v20 = vpop.f32.mrf.mxu1 }
 0xd4f   : > { %v1027_v47 = vadd.f32 %v1766_v48, %v1026_v20  ;;  %v720_v48 = vpop.permute.xlu0 %719 }
 0xd50   : > { %v1281_v2 = vpop.f32.mrf.mxu1 }
 0xd51   : > { %v1186_v49 = vmul.f32 -1.442695, %v1027_v47  ;;  %1041 = vrot.lane.b32.xlu0 %v1027_v47, %s1503_s22  ;;  %s1430_s22 = sshll.u32 %s1506_s13, 4  ;;  %s1431_s22 = int_to_ptr.vmem [resolvable:$false] %s1430_s22 }
 0xd52   : > { %v1029_v50 = vpop.f32.mrf.mxu1  ;;  %s1432_s21 = scalar_lea.vmem %s1431_s22, 1024  ;;  %p1433_p7 = scmp.lt.s32.totalorder %s1918_s26, %s1431_s22 }
 0xd53   : > { %1394 = vpow2.f32 %v1186_v49  ;;  %v1048_v3 = vpop.permute.xlu0 %1047  ;;  %p1434_p8 = scmp.lt.s32.totalorder %s1432_s21, %s1426_s20 }
 0xd54   : > { %v1282_v51 = vpop.f32.mrf.mxu1 }
 0xd55   : > { %723 = vrot.lane.b32.xlu0 %v1826_v61, %s1505_s12  ;;  %v726_v61 = vsel %vm560_vm4, %v1831_v13, %v720_v48  ;;  %p1435_p10 = por %p1434_p8, %p1433_p7 }
 0xd57   : > { %p1436_p0 = pnand %p1435_p10, %p1429_p5 }
 0xd60   : > { %v1395_v38 = vpop.eup %1394 }
 0xd61   : > { %v1035_v52 = vadd.f32 1.0, %v1395_v38 }
 0xd63   : > { %1396 = vrcp.f32 %v1035_v52 }
 0xd70   : > { %v1397_v53 = vpop.eup %1396 }
 0xd71   : > { %1051 = vrot.lane.b32.xlu0 %v1397_v53, %s1505_s12  ;;  %v1038_v39 = vsub.f32 1.0, %v1397_v53 }
 0xd73   : > { %v1039_v56 = vmul.f32 %v1038_v39, %v984_v54 }
 0xdc3   : > { %v1042_v55 = vpop.permute.xlu0 %1041 }
 0xdc4   : > { %v1044_v57 = vmul.f32 %v1397_v53, %v1042_v55 }
 0xdc6   : > { %v1045_v4 = vadd.f32 %v1044_v57, %v1039_v56 }
 0xdc7   : > { %v724_v58 = vpop.permute.xlu0 %723 }
 0xdc8   : > { %1059 = vst.msk [vmem:[#allocation2] sm:$0xff] %vm560_vm4, %v1045_v4  ;;  %v727_v59 = vsel %vm562_vm5, %v726_v61, %v724_v58  ;;  %v1054_v1 = vsel %vm560_vm4, %v1045_v4, %v1048_v3 }
 0xdc9   : > { %v728_v60 = vsel %vm564_vm6, %v727_v59, 0.0 }
 0xdca   : > { %1175 = vst [vmem:[%s1661_s24 + $0x8] sm:$0xff] %v728_v60 }
 0xde3   : > { %v1052_v0 = vpop.permute.xlu0 %1051 }
 0xde4   : > { %v1055_v13 = vsel %vm562_vm5, %v1054_v1, %v1052_v0 }
 0xde5   : > { %v1056_v5 = vsel %vm564_vm6, %v1055_v13, 0.0 }
 0xde6   : > { %1187 = vst [vmem:[%s1661_s24 + $0x18] sm:$0xff] %v1056_v5 }
 0xde7   : > { %1439 = shalt.err (!%p1436_p0)
}
 0xde8   : > { %s1440_s24 = scalar_lea.hbm %s1916_s25, 512  ;;  %s1444_s12 = scalar_lea.hbm %s1972_s8, 1024 }
 0xde9   : > { %p1441_p2 = scmp.ne.s32.totalorder %s1916_s25, %s1440_s24  ;;  %p1445_p3 = scmp.lt.s32.totalorder %s1916_s25, %s1972_s8 }
 0xdea   : > { %p1446_p6 = scmp.lt.s32.totalorder %s1444_s12, %s1440_s24 }
 0xdeb   : > { %p1442_p9 = pnand %p1441_p2, %p1982_p13 }
 0xdec   : > { %p1447_p11 = por %p1446_p6, %p1445_p3 }
 0xded   : > { %p1443_p1 = pneg %p1442_p9 }
 0xdef   : > { %p1448_p12 = pnand %p1447_p11, %p1443_p1 }
 0xdf1   : > { %1451 = shalt.err (!%p1448_p12)
}
 0xdf2   : > { %s1507_s16 = smov 128   ;;  %s1508_s20 = smov 8  }
 0xdf3   : > { %1285 = dma.vmem_to_hbm [thread:$0]  (%p1982_p13), %s1918_s26, 512, %s1916_s25, %s1065_s9, %s1507_s16, %s1507_s16, %s1508_s20  }
 0xdf4 PF: > { %s1093_s13 = sand.u32 1, %s1478_s27   ;;  %p1983_p4 = scmp.ne.s32.totalorder %s1979_s18, 0 }
 0xdf5   : > { %p1984_p5 = scmp.ge.s32.totalorder %s1490_s30, 2  ;;  %s1094_s22 = scalar_lea.sflag [#allocation6], %s1093_s13 }
 0xdf7   : > { %p1292_p7 = pnand %p1984_p5, %p1983_p4 }
 0xdf9   : > { %p1293_p8 = pneg %p1292_p7 }
 0xdfb   : > { %1473 = dma.done.wait (%p1293_p8), %s1094_s22, 512  }
 0xdfc   : > { %1475 = vsyncadd (%p1293_p8), %s1094_s22, 4294966784  ;;  %s1985_s21 = sld [smem:[#allocation10_spill]]  ;;  %p21_p10 = scmp.ge.s32.totalorder %s1579_s11, 4  }
 0xdfd   : > { %s1986_s27 = smov %s1482_s28  ;;  %s1987_s28 = smov %s1486_s29 }
 0xdfe   : > { %s1989_s30 = smov %s1579_s11  ;;  %23 = sbr.rel (!%p21_p10) target bundleno = 5 (0x5), region = 107 }
 0xe02   : > { %s1988_s29 = smov %s1985_s21 }
 0xe03   :  { %1099 = vsyncpa [#allocation5], 1 }
 0xe04   :  { %1101 = vsyncpa [#allocation5 + $0x1], 1 }
 0xe05   :  { %1102 = vsyncpa [#allocation6], 1 }
 0xe06   :  { %1104 = vsyncpa [#allocation6 + $0x1], 1 }

</bundles_post_ra>
